<compile_context>
chip_gen: v6e
topology: v6e:2x2x1
jax: 0.10.0
libtpu: 0.0.40
codegen_flags: <defaults>
</compile_context>

<pallas_src>
import numpy as np
import jax
import jax.numpy as jnp
from jax import lax
from jax.experimental import pallas as pl
from jax.experimental.pallas import tpu as pltpu


def _self_attn2d_kernel(x_ref, wqkv_ref, bqkv_ref, wo_ref, bo_ref, o_ref):
    # x_ref   : (B*C, S)        dense lane/sublane tile of activations
    # wqkv_ref: (B*3C, B*C)     block-diagonal QKV weight (Q rows pre-scaled)
    # bqkv_ref: (B*3C, 1)
    # wo_ref  : (C, C)          PyTorch (out, in) layout
    # bo_ref  : (C, 1)
    # o_ref   : (B*C, S)
    S = x_ref.shape[1]
    C = wo_ref.shape[0]
    B = x_ref.shape[0] // C

    wo = wo_ref[...]
    # Hoisted bias broadcasts (emitted once, not per batch).
    bqkv_b = jnp.broadcast_to(bqkv_ref[...], (3 * B * C, S))
    bo_b = jnp.broadcast_to(bo_ref[...], (C, S))

    # Fused QKV projection for ALL batches in one MXU issue (block-diag weight).
    qkv = jnp.dot(wqkv_ref[...], x_ref[...],
                  preferred_element_type=jnp.float32) + bqkv_b        # (B*3C, S)

    outs = []
    for b in range(B):                      # B is tiny and static -> unrolled
        base = 3 * C * b
        q = qkv[base + 0 * C: base + 1 * C]                           # (C, S_q), scale folded in
        k = qkv[base + 1 * C: base + 2 * C]                           # (C, S_t)
        v = qkv[base + 2 * C: base + 3 * C]                           # (C, S_t)

        # scores^T[t, s] = sum_c K[c,t] * Q[c,s]; contract channel dim of both
        # so the orientation folds into the MXU feed (no explicit transpose).
        scores_ts = lax.dot_general(k, q, (((0,), (0,)), ((), ())),
                                    preferred_element_type=jnp.float32)   # (S_t, S_q)

        # Softmax over the QUERY axis (dim=1 of (b, s, t)) == last axis here.
        m = jnp.max(scores_ts, axis=1, keepdims=True)                 # (S_t, 1)
        e_ts = jnp.exp(scores_ts - m)                                 # (S_t, S_q)
        denom = jnp.sum(e_ts, axis=1, keepdims=True)                  # (S_t, 1)
        inv = pl.reciprocal(denom, approx=False)                      # exact

        # Fold W_O and the per-t normalizer into the tiny V side:
        #   wv[t, c_out] = sum_h V[h, t] * W_O[c_out, h]
        wv = lax.dot_general(v, wo, (((0,), (1,)), ((), ())),
                             preferred_element_type=jnp.float32)      # (S_t, C)
        wv = wv * inv                                                 # (S_t, C)

        # out[c_out, s] = sum_t wv[t, c_out] * e_ts[t, s]
        # e_ts is the RHS contracting its first dim -> canonical, no (S,S) relayout.
        out = lax.dot_general(wv, e_ts, (((0,), (0,)), ((), ())),
                              preferred_element_type=jnp.float32) + bo_b   # (C, S)
        outs.append(out)

    # Single dense (B*C, S) store (full sublane tile, lane-dense, unmasked).
    o_ref[...] = jnp.concatenate(outs, axis=0).astype(o_ref.dtype)


def self_attention_2d(x, w_qkv, b_qkv, w_o, b_o):
    """x: (B, C, H, W).  w_qkv: (3C, C), b_qkv: (3C,), w_o: (C, C), b_o: (C,)."""
    B, C, H, W = x.shape
    S = H * W

    # Materialized (S,S) scores per batch: keep well inside VMEM.  (v7x: 64 MiB
    # physical / 32 MiB scoped default; larger S needs a flash-style rewrite.)
    if S * S * 4 > 8 * 1024 * 1024:
        raise NotImplementedError(
            "spatial size too large for the materialized-(S,S) kernel; "
            "use a flash-style online softmax over query blocks instead")

    # Fold 1/sqrt(C) into the Q rows of the QKV projection at trace time.
    scale = 1.0 / float(np.sqrt(C))            # d_head == C (heads unused in fwd)
    row_scale = jnp.concatenate([jnp.full((C,), scale, jnp.float32),
                                 jnp.ones((2 * C,), jnp.float32)])
    wqkv_s = w_qkv.astype(jnp.float32) * row_scale[:, None]           # (3C, C)
    bqkv_s = b_qkv.astype(jnp.float32) * row_scale                    # (3C,)

    # Block-diagonal weights so the fused QKV projection runs once for all B.
    wqkv_big = jnp.kron(jnp.eye(B, dtype=jnp.float32), wqkv_s)        # (B*3C, B*C)
    bqkv_big = jnp.tile(bqkv_s, B).reshape(B * 3 * C, 1)              # (B*3C, 1)

    # NCHW reshapes directly to the dense (B*C, S) layout: no transpose.
    x_flat = x.reshape(B * C, S).astype(jnp.float32)
    wo = w_o.astype(jnp.float32)
    bo = b_o.reshape(C, 1).astype(jnp.float32)

    flops = (2 * (3 * B * C) * (B * C) * S              # fused block-diag QKV
             + B * (2 * C * S * S                       # K^T . Q scores
                    + 2 * C * C * S                     # V . W_O fold
                    + 2 * C * S * S))                   # (S,S) . folded-V
    transcendentals = B * S * S                         # exp
    bytes_accessed = 4 * (2 * B * C * S + (3 * B * C) * (B * C)
                          + 3 * B * C + C * C + C)

    vmem = pl.BlockSpec(memory_space=pltpu.MemorySpace.VMEM)

    out = pl.pallas_call(
        _self_attn2d_kernel,
        out_shape=jax.ShapeDtypeStruct((B * C, S), jnp.float32),
        in_specs=[vmem, vmem, vmem, vmem, vmem],
        out_specs=vmem,
        cost_estimate=pl.CostEstimate(
            flops=flops,
            transcendentals=transcendentals,
            bytes_accessed=bytes_accessed),
    )(x_flat, wqkv_big, bqkv_big, wo, bo)

    # (B*C, S) reshapes directly back to NCHW.
    return out.reshape(B, C, H, W)


def _reference_forward(x, w_qkv, b_qkv, w_o, b_o):
    """Pure-JAX replica of the PyTorch forward (for verification only)."""
    B, C, H, W = x.shape
    S = H * W
    xf = jnp.transpose(x.reshape(B, C, S), (0, 2, 1))           # (B, S, C)
    qkv = xf @ w_qkv.T + b_qkv                                  # (B, S, 3C)
    Q, K, V = jnp.split(qkv, 3, axis=-1)
    scores = jnp.einsum('bsh,bth->bst', Q, K) / np.sqrt(C)
    A = jax.nn.softmax(scores, axis=1)                          # dim=1 == query axis
    out = jnp.einsum('bst,bth->bsh', A, V)
    out = out @ w_o.T + b_o
    return jnp.transpose(out, (0, 2, 1)).reshape(B, C, H, W)


if __name__ == "__main__":
    # Module config: channels=4, num_heads=4 (head_size=1, unused by forward).
    B, C, H, W = 2, 4, 16, 16

    key = jax.random.PRNGKey(0)
    kx, k1, k2, k3, k4 = jax.random.split(key, 5)

    x = jax.random.normal(kx, (B, C, H, W), dtype=jnp.float32)

    # Deterministic parameter init (nn.Linear-like uniform bounds).
    bound = 1.0 / np.sqrt(C)
    w_qkv = jax.random.uniform(k1, (3 * C, C), jnp.float32, -bound, bound)
    b_qkv = jax.random.uniform(k2, (3 * C,), jnp.float32, -bound, bound)
    w_o = jax.random.uniform(k3, (C, C), jnp.float32, -bound, bound)
    b_o = jax.random.uniform(k4, (C,), jnp.float32, -bound, bound)

    out = jax.block_until_ready(self_attention_2d(x, w_qkv, b_qkv, w_o, b_o))
    ref = jax.block_until_ready(_reference_forward(x, w_qkv, b_qkv, w_o, b_o))
    np.testing.assert_allclose(np.asarray(out), np.asarray(ref), rtol=2e-5, atol=2e-5)

    print("KERNEL_OK")
</pallas_src>

<mosaic_0001>
module attributes {stable_mosaic.version = 11 : i64} {
  func.func @_self_attn2d_kernel(%arg0: memref<8x256xf32, #tpu.memory_space<vmem>>, %arg1: memref<24x8xf32, #tpu.memory_space<vmem>>, %arg2: memref<24x1xf32, #tpu.memory_space<vmem>>, %arg3: memref<4x4xf32, #tpu.memory_space<vmem>>, %arg4: memref<4x1xf32, #tpu.memory_space<vmem>>, %arg5: memref<8x256xf32, #tpu.memory_space<vmem>>) attributes {dimension_semantics = [], scalar_prefetch = 0 : i64, scratch_operands = 0 : i64, tpu.core_type = #tpu.core_type<tc>} {
    %c0 = arith.constant 0 : index
    %c0_0 = arith.constant 0 : index
    %0 = vector.load %arg3[%c0, %c0_0] : memref<4x4xf32, #tpu.memory_space<vmem>>, vector<4x4xf32>
    %c0_1 = arith.constant 0 : index
    %c0_2 = arith.constant 0 : index
    %1 = vector.load %arg2[%c0_1, %c0_2] : memref<24x1xf32, #tpu.memory_space<vmem>>, vector<24x1xf32>
    %2 = vector.shape_cast %1 : vector<24x1xf32> to vector<24x1xf32>
    %3 = vector.broadcast %2 : vector<24x1xf32> to vector<24x256xf32>
    %c0_3 = arith.constant 0 : index
    %c0_4 = arith.constant 0 : index
    %4 = vector.load %arg4[%c0_3, %c0_4] : memref<4x1xf32, #tpu.memory_space<vmem>>, vector<4x1xf32>
    %5 = vector.shape_cast %4 : vector<4x1xf32> to vector<4x1xf32>
    %6 = vector.broadcast %5 : vector<4x1xf32> to vector<4x256xf32>
    %c0_5 = arith.constant 0 : index
    %c0_6 = arith.constant 0 : index
    %7 = vector.load %arg1[%c0_5, %c0_6] : memref<24x8xf32, #tpu.memory_space<vmem>>, vector<24x8xf32>
    %c0_7 = arith.constant 0 : index
    %c0_8 = arith.constant 0 : index
    %8 = vector.load %arg0[%c0_7, %c0_8] : memref<8x256xf32, #tpu.memory_space<vmem>>, vector<8x256xf32>
    %cst = arith.constant dense<0.000000e+00> : vector<24x256xf32>
    %9 = tpu.matmul %7, %8, %cst {dimension_numbers = #tpu.dot_dimension_numbers<[1], [0], [0], [1], [0, 0, 1, 1], [], []>} : vector<24x8xf32>, vector<8x256xf32>, vector<24x256xf32> -> vector<24x256xf32>
    %10 = arith.addf %9, %3 : vector<24x256xf32>
    %11 = vector.extract_strided_slice %10 {offsets = [0, 0], sizes = [4, 256], strides = [1, 1]} : vector<24x256xf32> to vector<4x256xf32>
    %12 = vector.extract_strided_slice %10 {offsets = [4, 0], sizes = [4, 256], strides = [1, 1]} : vector<24x256xf32> to vector<4x256xf32>
    %13 = vector.extract_strided_slice %10 {offsets = [8, 0], sizes = [4, 256], strides = [1, 1]} : vector<24x256xf32> to vector<4x256xf32>
    %cst_9 = arith.constant dense<0.000000e+00> : vector<256x256xf32>
    %14 = tpu.matmul %12, %11, %cst_9 {dimension_numbers = #tpu.dot_dimension_numbers<[0], [0], [1], [1], [0, 1, 1, 1], [], []>} : vector<4x256xf32>, vector<4x256xf32>, vector<256x256xf32> -> vector<256x256xf32>
    %cst_10 = arith.constant dense<0xFF800000> : vector<256xf32>
    %15 = vector.multi_reduction <maximumf>, %14, %cst_10 [1] : vector<256x256xf32> to vector<256xf32>
    %16 = vector.shape_cast %15 : vector<256xf32> to vector<256x1xf32>
    %17 = vector.broadcast %16 : vector<256x1xf32> to vector<256x256xf32>
    %18 = arith.subf %14, %17 : vector<256x256xf32>
    %19 = math.exp %18 : vector<256x256xf32>
    %cst_11 = arith.constant dense<0.000000e+00> : vector<256xf32>
    %20 = vector.multi_reduction <add>, %19, %cst_11 [1] : vector<256x256xf32> to vector<256xf32>
    %21 = vector.shape_cast %20 : vector<256xf32> to vector<256x1xf32>
    %22 = tpu.reciprocal %21 : vector<256x1xf32> -> vector<256x1xf32>
    %cst_12 = arith.constant dense<0.000000e+00> : vector<256x4xf32>
    %23 = tpu.matmul %13, %0, %cst_12 {dimension_numbers = #tpu.dot_dimension_numbers<[0], [1], [1], [0], [0, 1, 1, 0], [], []>} : vector<4x256xf32>, vector<4x4xf32>, vector<256x4xf32> -> vector<256x4xf32>
    %24 = vector.broadcast %22 : vector<256x1xf32> to vector<256x4xf32>
    %25 = arith.mulf %23, %24 : vector<256x4xf32>
    %cst_13 = arith.constant dense<0.000000e+00> : vector<4x256xf32>
    %26 = tpu.matmul %25, %19, %cst_13 {dimension_numbers = #tpu.dot_dimension_numbers<[0], [0], [1], [1], [0, 1, 1, 1], [], []>} : vector<256x4xf32>, vector<256x256xf32>, vector<4x256xf32> -> vector<4x256xf32>
    %27 = arith.addf %26, %6 : vector<4x256xf32>
    %28 = vector.extract_strided_slice %10 {offsets = [12, 0], sizes = [4, 256], strides = [1, 1]} : vector<24x256xf32> to vector<4x256xf32>
    %29 = vector.extract_strided_slice %10 {offsets = [16, 0], sizes = [4, 256], strides = [1, 1]} : vector<24x256xf32> to vector<4x256xf32>
    %30 = vector.extract_strided_slice %10 {offsets = [20, 0], sizes = [4, 256], strides = [1, 1]} : vector<24x256xf32> to vector<4x256xf32>
    %cst_14 = arith.constant dense<0.000000e+00> : vector<256x256xf32>
    %31 = tpu.matmul %29, %28, %cst_14 {dimension_numbers = #tpu.dot_dimension_numbers<[0], [0], [1], [1], [0, 1, 1, 1], [], []>} : vector<4x256xf32>, vector<4x256xf32>, vector<256x256xf32> -> vector<256x256xf32>
    %cst_15 = arith.constant dense<0xFF800000> : vector<256xf32>
    %32 = vector.multi_reduction <maximumf>, %31, %cst_15 [1] : vector<256x256xf32> to vector<256xf32>
    %33 = vector.shape_cast %32 : vector<256xf32> to vector<256x1xf32>
    %34 = vector.broadcast %33 : vector<256x1xf32> to vector<256x256xf32>
    %35 = arith.subf %31, %34 : vector<256x256xf32>
    %36 = math.exp %35 : vector<256x256xf32>
    %cst_16 = arith.constant dense<0.000000e+00> : vector<256xf32>
    %37 = vector.multi_reduction <add>, %36, %cst_16 [1] : vector<256x256xf32> to vector<256xf32>
    %38 = vector.shape_cast %37 : vector<256xf32> to vector<256x1xf32>
    %39 = tpu.reciprocal %38 : vector<256x1xf32> -> vector<256x1xf32>
    %cst_17 = arith.constant dense<0.000000e+00> : vector<256x4xf32>
    %40 = tpu.matmul %30, %0, %cst_17 {dimension_numbers = #tpu.dot_dimension_numbers<[0], [1], [1], [0], [0, 1, 1, 0], [], []>} : vector<4x256xf32>, vector<4x4xf32>, vector<256x4xf32> -> vector<256x4xf32>
    %41 = vector.broadcast %39 : vector<256x1xf32> to vector<256x4xf32>
    %42 = arith.mulf %40, %41 : vector<256x4xf32>
    %cst_18 = arith.constant dense<0.000000e+00> : vector<4x256xf32>
    %43 = tpu.matmul %42, %36, %cst_18 {dimension_numbers = #tpu.dot_dimension_numbers<[0], [0], [1], [1], [0, 1, 1, 1], [], []>} : vector<256x4xf32>, vector<256x256xf32>, vector<4x256xf32> -> vector<4x256xf32>
    %44 = arith.addf %43, %6 : vector<4x256xf32>
    %45 = tpu.concatenate %27, %44 in 0 : vector<4x256xf32>, vector<4x256xf32> -> vector<8x256xf32>
    %c0_19 = arith.constant 0 : index
    %c0_20 = arith.constant 0 : index
    %46 = vector.load %arg5[%c0_19, %c0_20] : memref<8x256xf32, #tpu.memory_space<vmem>>, vector<8x256xf32>
    tpu.vector_store %arg5[%c0_19, %c0_20], %45 {strides = array<i32>} : memref<8x256xf32, #tpu.memory_space<vmem>>, vector<8x256xf32>,
    return
  }
}

</mosaic_0001>

<bundles_post_ra>
// kernel: tpu_custom_call.1
= control target key start
LH: loop header
LB: loop body
LE: loop exit
PB: predicated region body
PF: predicated region fallthrough
CT: control target
= control target key end

     0   :  { %vm51_vm0 = vcmask 64512   ;;  %v5042_v3 = vmov 0.0   ;;  %s5036_s0 = inlined_call_operand.vmem [shape: f32[8,256], index: 0, kind: input, shape index: {}]   ;;  %s5037_s1 = inlined_call_operand.vmem [shape: f32[24,8], index: 1, kind: input, shape index: {}]   ;;  %s5038_s2 = inlined_call_operand.vmem [shape: f32[24,1], index: 2, kind: input, shape index: {}]   ;;  %s5039_s3 = inlined_call_operand.vmem [shape: f32[4,4], index: 3, kind: input, shape index: {}]   ;;  %s5040_s4 = inlined_call_operand.vmem [shape: f32[4,1], index: 4, kind: input, shape index: {}]   ;;  %s5041_s5 = inlined_call_operand.hbm [shape: f32[8,256], index: 5, kind: output, shape index: {}]  }
   0x1   :  { %v50_v0 = vld [vmem:[%s5036_s0 + $0x8] sm:$0xff]  ;;  %v49_v1 = vld [vmem:[%s5036_s0] sm:$0xff]  ;;  %125 = vmatprep.mubr.f32.mxu0 %v5042_v3 }
   0x2   :  { %v46_v2 = vld [vmem:[%s5037_s1] sm:$0xff]  ;;  %91 = vmatprep.subr.mxu0 %v50_v0 }
   0x3   :  { %v22_v4 = vld [vmem:[%s5038_s2] sm:$0xff] }
   0x4   :  { %10 = vsyncpa [#allocation3], 0  ;;  %92 = vmatpush1.msra.mxu0 %v49_v1  ;;  %v3758_v5 = vmov 0   ;;  %3270 = vmatprep.subr.mxu1 %v50_v0  ;;  %v47_v6 = vld [vmem:[%s5037_s1 + $0x8] sm:$0xff]  ;;  %v48_v7 = vld [vmem:[%s5037_s1 + $0x10] sm:$0xff]  ;;  %vm311_vm1 = vcmask 1043456  }
   0x5   :  { %3275 = vset.pattern.permute.xlu0 %v3758_v5  ;;  %2967 = vmatmul.mubr.msk.f32.vlgmr.msra.gmra.mxu0 %vm51_vm0, %v46_v2  ;;  %v23_v15 = vld [vmem:[%s5038_s2 + $0x8] sm:$0xff]  ;;  %vm214_vm2 = vcmask 31744   ;;  %v21_v53 = vld [vmem:[%s5039_s3] sm:$0xf] }
   0x6   :  { %27 = vperm.xlu0 %3275, %v22_v4   ;;  %131 = vmatprep.mubr.f32.mxu1 %v5042_v3 }
   0x7   :  { %3271 = vmatpush1.msra.mxu1 %v49_v1  ;;  %3170 = vmatprep.subr.msk.mxu0 %vm214_vm2, %v21_v53 }
   0x8   :  { %2968 = vmatmul.mubr.msk.f32.vlgmr.msra.gmra.mxu1 %vm51_vm0, %v47_v6  ;;  %3171 = vmatpush3.xpose.msk.msra.mxu0 %vm214_vm2, %v21_v53 }
   0x9   :  { %137 = vmatprep.mubr.f32.mxu1 %v5042_v3 }
   0xc   :  { %2969 = vmatmul.mubr.msk.f32.gmra.mxu1 %vm51_vm0, %v48_v7 }
   0xd   :  { %380 = vmatprep.mubr.f32.mxu1 %v5042_v3 }
  0x81   :  { %v28_v8 = vpop.permute.xlu0 %27 }
  0xc5   :  { %v127_v9 = vpop.f32.mrf.mxu0 }
  0xc6   :  { %v128_v10 = vadd.f32 %v127_v9, %v28_v8 }
  0xc7   :  { %v129_v11 = vpop.f32.mrf.mxu0 }
  0xc8   :  { %v130_v12 = vadd.f32 %v129_v11, %v28_v8  ;;  %v146_v13 = vrot.slane %v128_v10, 4  ;;  %v133_v48 = vpop.f32.mrf.mxu1 }
  0xca   :  { %2970 = vmatprep.subr.msk.mxu1 %vm311_vm1, %v130_v12  ;;  %150 = vxpose.xlu0.b32.start.end [1/1] (short) %v146_v13, 128  ;;  %v147_v14 = vrot.slane %v130_v12, 4  ;;  %v135_v49 = vpop.f32.mrf.mxu1 }
  0xcb   :  { %2971 = vmatpush1.msk.msra.mxu1 %vm311_vm1, %v128_v10 }
  0xcc   :  { %182 = vxpose.xlu1.b32.start.end [1/1] (short) %v147_v14, 128  ;;  %3220 = vmatprep.subr.msk.mxu1 %vm214_vm2, %v21_v53  ;;  %v3896_v54 = vpop.f32.mrf.mxu1 }
  0xcd   :  { %5076 = vst [vmem:[#allocation7_spill] sm:$0xff] %v3896_v54 }
  0xce   :  { %v3898_v55 = vpop.f32.mrf.mxu1 }
  0xcf   :  { %5077 = vst [vmem:[#allocation8_spill] sm:$0xff] %v3898_v55 }
  0xea   :  { %3276 = vset.pattern.permute.xlu1 %v3758_v5 }
 0x126   :  { %32 = vperm.xlu1 %3276, %v23_v15  }
 0x146   :  { %v166_v16 = vpop.trf.xlu0 }
 0x147   :  { %2972 = vmatmul.mubr.msk.f32.vlgmr.msra.gmra.mxu1 %vm214_vm2, %v166_v16 }
 0x148   :  { %386 = vmatprep.mubr.f32.mxu1 %v5042_v3  ;;  %v198_v17 = vpop.trf.xlu1  ;;  %3221 = vmatpush3.xpose.msk.msra.mxu1 %vm214_vm2, %v21_v53 }
 0x14a   :  { %v167_v18 = vpop.trf.xlu0 }
 0x14b   :  { %2973 = vmatmul.mubr.msk.f32.gmra.mxu1 %vm214_vm2, %v167_v18 }
 0x14c   :  { %392 = vmatprep.mubr.f32.mxu1 %v5042_v3  ;;  %v199_v19 = vpop.trf.xlu1 }
 0x14e   :  { %v168_v20 = vpop.trf.xlu0 }
 0x14f   :  { %2974 = vmatmul.mubr.msk.f32.gmra.mxu1 %vm214_vm2, %v168_v20 }
 0x150   :  { %398 = vmatprep.mubr.f32.mxu1 %v5042_v3  ;;  %v200_v21 = vpop.trf.xlu1 }
 0x152   :  { %v169_v22 = vpop.trf.xlu0 }
 0x153   :  { %2975 = vmatmul.mubr.msk.f32.gmra.mxu1 %vm214_vm2, %v169_v22 }
 0x154   :  { %404 = vmatprep.mubr.f32.mxu1 %v5042_v3  ;;  %v201_v23 = vpop.trf.xlu1 }
 0x156   :  { %v170_v24 = vpop.trf.xlu0 }
 0x157   :  { %2976 = vmatmul.mubr.msk.f32.gmra.mxu1 %vm214_vm2, %v170_v24 }
 0x158   :  { %410 = vmatprep.mubr.f32.mxu1 %v5042_v3  ;;  %v202_v25 = vpop.trf.xlu1 }
 0x15a   :  { %v171_v26 = vpop.trf.xlu0 }
 0x15b   :  { %2977 = vmatmul.mubr.msk.f32.gmra.mxu1 %vm214_vm2, %v171_v26 }
 0x15c   :  { %416 = vmatprep.mubr.f32.mxu1 %v5042_v3  ;;  %v203_v28 = vpop.trf.xlu1 }
 0x15e   :  { %v172_v27 = vpop.trf.xlu0 }
 0x15f   :  { %2978 = vmatmul.mubr.msk.f32.gmra.mxu1 %vm214_vm2, %v172_v27 }
 0x160   :  { %422 = vmatprep.mubr.f32.mxu1 %v5042_v3  ;;  %v204_v30 = vpop.trf.xlu1 }
 0x162   :  { %v173_v29 = vpop.trf.xlu0 }
 0x163   :  { %2979 = vmatmul.mubr.msk.f32.gmra.mxu1 %vm214_vm2, %v173_v29 }
 0x164   :  { %428 = vmatprep.mubr.f32.mxu1 %v5042_v3  ;;  %v205_v33 = vpop.trf.xlu1 }
 0x166   :  { %v174_v31 = vpop.trf.xlu0 }
 0x167   :  { %2980 = vmatmul.mubr.msk.f32.gmra.mxu1 %vm214_vm2, %v174_v31 }
 0x168   :  { %434 = vmatprep.mubr.f32.mxu1 %v5042_v3  ;;  %v206_v35 = vpop.trf.xlu1 }
 0x16a   :  { %v175_v32 = vpop.trf.xlu0 }
 0x16b   :  { %2981 = vmatmul.mubr.msk.f32.gmra.mxu1 %vm214_vm2, %v175_v32 }
 0x16c   :  { %440 = vmatprep.mubr.f32.mxu1 %v5042_v3  ;;  %v207_v38 = vpop.trf.xlu1 }
 0x16e   :  { %v176_v34 = vpop.trf.xlu0 }
 0x16f   :  { %2982 = vmatmul.mubr.msk.f32.gmra.mxu1 %vm214_vm2, %v176_v34 }
 0x170   :  { %446 = vmatprep.mubr.f32.mxu1 %v5042_v3  ;;  %v208_v40 = vpop.trf.xlu1 }
 0x172   :  { %v177_v36 = vpop.trf.xlu0 }
 0x173   :  { %2983 = vmatmul.mubr.msk.f32.gmra.mxu1 %vm214_vm2, %v177_v36 }
 0x174   :  { %452 = vmatprep.mubr.f32.mxu1 %v5042_v3  ;;  %v209_v43 = vpop.trf.xlu1 }
 0x176   :  { %v178_v37 = vpop.trf.xlu0 }
 0x177   :  { %2984 = vmatmul.mubr.msk.f32.gmra.mxu1 %vm214_vm2, %v178_v37 }
 0x178   :  { %458 = vmatprep.mubr.f32.mxu1 %v5042_v3  ;;  %v210_v44 = vpop.trf.xlu1 }
 0x17a   :  { %v179_v39 = vpop.trf.xlu0 }
 0x17b   :  { %2985 = vmatmul.mubr.msk.f32.gmra.mxu1 %vm214_vm2, %v179_v39 }
 0x17c   :  { %464 = vmatprep.mubr.f32.mxu1 %v5042_v3  ;;  %v211_v45 = vpop.trf.xlu1 }
 0x17e   :  { %v180_v41 = vpop.trf.xlu0 }
 0x17f   :  { %2986 = vmatmul.mubr.msk.f32.gmra.mxu1 %vm214_vm2, %v180_v41 }
 0x180   :  { %470 = vmatprep.mubr.f32.mxu1 %v5042_v3  ;;  %v212_v46 = vpop.trf.xlu1 }
 0x182   :  { %v181_v42 = vpop.trf.xlu0 }
 0x183   :  { %2987 = vmatmul.mubr.msk.f32.gmra.mxu1 %vm214_vm2, %v181_v42 }
 0x184   :  { %476 = vmatprep.mubr.f32.mxu1 %v5042_v3  ;;  %v213_v47 = vpop.trf.xlu1 }
 0x187   :  { %2988 = vmatmul.mubr.msk.f32.gmra.mxu1 %vm214_vm2, %v198_v17 }
 0x188   :  { %482 = vmatprep.mubr.f32.mxu1 %v5042_v3 }
 0x18b   :  { %2989 = vmatmul.mubr.msk.f32.gmra.mxu1 %vm214_vm2, %v199_v19 }
 0x18c   :  { %488 = vmatprep.mubr.f32.mxu1 %v5042_v3 }
 0x18f   :  { %2990 = vmatmul.mubr.msk.f32.gmra.mxu1 %vm214_vm2, %v200_v21 }
 0x190   :  { %494 = vmatprep.mubr.f32.mxu1 %v5042_v3 }
 0x193   :  { %2991 = vmatmul.mubr.msk.f32.gmra.mxu1 %vm214_vm2, %v201_v23 }
 0x194   :  { %500 = vmatprep.mubr.f32.mxu1 %v5042_v3 }
 0x197   :  { %2992 = vmatmul.mubr.msk.f32.gmra.mxu1 %vm214_vm2, %v202_v25 }
 0x198   :  { %506 = vmatprep.mubr.f32.mxu1 %v5042_v3 }
 0x19b   :  { %2993 = vmatmul.mubr.msk.f32.gmra.mxu1 %vm214_vm2, %v203_v28 }
 0x19c   :  { %512 = vmatprep.mubr.f32.mxu1 %v5042_v3 }
 0x19f   :  { %2994 = vmatmul.mubr.msk.f32.gmra.mxu1 %vm214_vm2, %v204_v30 }
 0x1a0   :  { %518 = vmatprep.mubr.f32.mxu1 %v5042_v3 }
 0x1a1   :  { %v33_v50 = vpop.permute.xlu1 %32 }
 0x1a2   :  { %v3866_v51 = vadd.f32 %v133_v48, %v33_v50  ;;  %v3868_v52 = vadd.f32 %v135_v49, %v33_v50 }
 0x1a3   :  { %2995 = vmatmul.mubr.msk.f32.gmra.mxu1 %vm214_vm2, %v205_v33 }
 0x1a4   :  { %5074 = vst [vmem:[#allocation5_spill] sm:$0xff] %v3866_v51  ;;  %5075 = vst [vmem:[#allocation6_spill] sm:$0xff] %v3868_v52  ;;  %524 = vmatprep.mubr.f32.mxu1 %v5042_v3  ;;  %989 = vxpose.xlu0.b32.start.end [1/1] (short) %v3866_v51, 128 }
 0x1a5   :  { %1021 = vxpose.xlu1.b32.start.end [1/1] (short) %v3868_v52, 128 }
 0x1a7   :  { %2996 = vmatmul.mubr.msk.f32.gmra.mxu1 %vm214_vm2, %v206_v35 }
 0x1a8   :  { %530 = vmatprep.mubr.f32.mxu1 %v5042_v3 }
 0x1ab   :  { %2997 = vmatmul.mubr.msk.f32.gmra.mxu1 %vm214_vm2, %v207_v38 }
 0x1ac   :  { %536 = vmatprep.mubr.f32.mxu1 %v5042_v3 }
 0x1af   :  { %2998 = vmatmul.mubr.msk.f32.gmra.mxu1 %vm214_vm2, %v208_v40 }
 0x1b0   :  { %542 = vmatprep.mubr.f32.mxu1 %v5042_v3 }
 0x1b3   :  { %2999 = vmatmul.mubr.msk.f32.gmra.mxu1 %vm214_vm2, %v209_v43 }
 0x1b4   :  { %548 = vmatprep.mubr.f32.mxu1 %v5042_v3 }
 0x1b7   :  { %3000 = vmatmul.mubr.msk.f32.gmra.mxu1 %vm214_vm2, %v210_v44 }
 0x1b8   :  { %554 = vmatprep.mubr.f32.mxu1 %v5042_v3 }
 0x1bb   :  { %3001 = vmatmul.mubr.msk.f32.gmra.mxu1 %vm214_vm2, %v211_v45 }
 0x1bc   :  { %560 = vmatprep.mubr.f32.mxu1 %v5042_v3 }
 0x1bf   :  { %3002 = vmatmul.mubr.msk.f32.gmra.mxu1 %vm214_vm2, %v212_v46 }
 0x1c0   :  { %566 = vmatprep.mubr.f32.mxu1 %v5042_v3 }
 0x1c3   :  { %3003 = vmatmul.mubr.msk.f32.gmra.mxu1 %vm214_vm2, %v213_v47 }
 0x207   :  { %v3900_v56 = vpop.f32.mrf.mxu1 }
 0x209   :  { %v3902_v57 = vpop.f32.mrf.mxu1 }
 0x20a   :  { %v573_v58 = vmax.f32 %v3900_v56, %v3902_v57 }
 0x20b   :  { %v3906_v59 = vpop.f32.mrf.mxu1 }
 0x20c   :  { %574 = vmax.xlane.f32.xlu1 %v573_v58 }
 0x20d   :  { %v3908_v60 = vpop.f32.mrf.mxu1 }
 0x20e   :  { %v576_v61 = vmax.f32 %v3906_v59, %v3908_v60 }
 0x20f   :  { %v3912_v62 = vpop.f32.mrf.mxu1 }
 0x210   :  { %577 = vmax.xlane.f32.xlu0 %v576_v61 }
 0x211   :  { %v3914_v63 = vpop.f32.mrf.mxu1 }
 0x212   :  { %v579_v0 = vmax.f32 %v3912_v62, %v3914_v63 }
 0x213   :  { %v3918_v1 = vpop.f32.mrf.mxu1 }
 0x214   :  { %580 = vmax.xlane.f32.xlu0 %v579_v0 }
 0x215   :  { %v3920_v2 = vpop.f32.mrf.mxu1 }
 0x216   :  { %v582_v4 = vmax.f32 %v3918_v1, %v3920_v2 }
 0x217   :  { %v3924_v5 = vpop.f32.mrf.mxu1 }
 0x218   :  { %583 = vmax.xlane.f32.xlu0 %v582_v4 }
 0x219   :  { %v3926_v6 = vpop.f32.mrf.mxu1 }
 0x21a   :  { %v585_v7 = vmax.f32 %v3924_v5, %v3926_v6 }
 0x21b   :  { %v3930_v8 = vpop.f32.mrf.mxu1 }
 0x21c   :  { %586 = vmax.xlane.f32.xlu0 %v585_v7 }
 0x21d   :  { %v3932_v9 = vpop.f32.mrf.mxu1 }
 0x21e   :  { %v588_v10 = vmax.f32 %v3930_v8, %v3932_v9 }
 0x21f   :  { %v3936_v11 = vpop.f32.mrf.mxu1 }
 0x220   :  { %589 = vmax.xlane.f32.xlu1 %v588_v10  ;;  %v1005_v12 = vpop.trf.xlu0 }
 0x221   :  { %v3938_v13 = vpop.f32.mrf.mxu1  ;;  %3172 = vmatprep.mubr.msk.f32.mxu0 %vm214_vm2, %v1005_v12  ;;  %v3943_v15 = vpop.trf.xlu1 }
 0x222   :  { %v591_v14 = vmax.f32 %v3936_v11, %v3938_v13 }
 0x223   :  { %v3945_v16 = vpop.f32.mrf.mxu1 }
 0x224   :  { %592 = vmax.xlane.f32.xlu1 %v591_v14  ;;  %v1006_v17 = vpop.trf.xlu0 }
 0x225   :  { %v3947_v18 = vpop.f32.mrf.mxu1  ;;  %3173 = vmatmul.mubr.msk.f32.vlgmr.msra.gmra.mxu0 %vm214_vm2, %v1006_v17  ;;  %v3954_v21 = vpop.trf.xlu1 }
 0x226   :  { %v594_v19 = vmax.f32 %v3945_v16, %v3947_v18 }
 0x227   :  { %v3952_v20 = vpop.f32.mrf.mxu1 }
 0x228   :  { %595 = vmax.xlane.f32.xlu1 %v594_v19  ;;  %v1007_v22 = vpop.trf.xlu0 }
 0x229   :  { %v3956_v23 = vpop.f32.mrf.mxu1  ;;  %3175 = vmatprep.mubr.msk.f32.mxu0 %vm214_vm2, %v1007_v22  ;;  %v3968_v29 = vpop.trf.xlu1 }
 0x22a   :  { %v597_v24 = vmax.f32 %v3952_v20, %v3956_v23 }
 0x22b   :  { %v3961_v25 = vpop.f32.mrf.mxu1 }
 0x22c   :  { %598 = vmax.xlane.f32.xlu1 %v597_v24  ;;  %v1008_v26 = vpop.trf.xlu0 }
 0x22d   :  { %v3963_v27 = vpop.f32.mrf.mxu1  ;;  %3176 = vmatmul.mubr.msk.f32.gmra.mxu0 %vm214_vm2, %v1008_v26  ;;  %v3979_v35 = vpop.trf.xlu1 }
 0x22e   :  { %v600_v28 = vmax.f32 %v3961_v25, %v3963_v27 }
 0x22f   :  { %v3970_v30 = vpop.f32.mrf.mxu1 }
 0x230   :  { %601 = vmax.xlane.f32.xlu1 %v600_v28  ;;  %v1009_v31 = vpop.trf.xlu0 }
 0x231   :  { %v3972_v32 = vpop.f32.mrf.mxu1  ;;  %3178 = vmatprep.mubr.msk.f32.mxu0 %vm214_vm2, %v1009_v31  ;;  %v3993_v43 = vpop.trf.xlu1 }
 0x232   :  { %v603_v33 = vmax.f32 %v3970_v30, %v3972_v32 }
 0x233   :  { %v3977_v34 = vpop.f32.mrf.mxu1 }
 0x234   :  { %604 = vmax.xlane.f32.xlu1 %v603_v33  ;;  %v1010_v36 = vpop.trf.xlu0 }
 0x235   :  { %v3981_v37 = vpop.f32.mrf.mxu1  ;;  %3179 = vmatmul.mubr.msk.f32.gmra.mxu0 %vm214_vm2, %v1010_v36  ;;  %v4004_v49 = vpop.trf.xlu1 }
 0x236   :  { %v606_v38 = vmax.f32 %v3977_v34, %v3981_v37 }
 0x237   :  { %v3986_v39 = vpop.f32.mrf.mxu1 }
 0x238   :  { %607 = vmax.xlane.f32.xlu1 %v606_v38  ;;  %v1011_v40 = vpop.trf.xlu0 }
 0x239   :  { %v3988_v41 = vpop.f32.mrf.mxu1  ;;  %3181 = vmatprep.mubr.msk.f32.mxu0 %vm214_vm2, %v1011_v40  ;;  %v1043_v10 = vpop.trf.xlu1 }
 0x23a   :  { %v609_v42 = vmax.f32 %v3986_v39, %v3988_v41 }
 0x23b   :  { %v3995_v44 = vpop.f32.mrf.mxu1 }
 0x23c   :  { %610 = vmax.xlane.f32.xlu1 %v609_v42  ;;  %v1012_v45 = vpop.trf.xlu0 }
 0x23d   :  { %v3997_v46 = vpop.f32.mrf.mxu1  ;;  %3182 = vmatmul.mubr.msk.f32.gmra.mxu0 %vm214_vm2, %v1012_v45  ;;  %v1044_v24 = vpop.trf.xlu1 }
 0x23e   :  { %v612_v47 = vmax.f32 %v3995_v44, %v3997_v46 }
 0x23f   :  { %v4002_v48 = vpop.f32.mrf.mxu1 }
 0x240   :  { %613 = vmax.xlane.f32.xlu1 %v612_v47  ;;  %v1013_v50 = vpop.trf.xlu0 }
 0x241   :  { %v4006_v53 = vpop.f32.mrf.mxu1  ;;  %3184 = vmatprep.mubr.msk.f32.mxu0 %vm214_vm2, %v1013_v50  ;;  %v1045_v42 = vpop.trf.xlu1 }
 0x242   :  { %v615_v58 = vmax.f32 %v4002_v48, %v4006_v53 }
 0x243   :  { %v4011_v61 = vpop.f32.mrf.mxu1 }
 0x244   :  { %616 = vmax.xlane.f32.xlu1 %v615_v58  ;;  %v1014_v0 = vpop.trf.xlu0 }
 0x245   :  { %v4013_v4 = vpop.f32.mrf.mxu1  ;;  %3185 = vmatmul.mubr.msk.f32.gmra.mxu0 %vm214_vm2, %v1014_v0 }
 0x246   :  { %v618_v7 = vmax.f32 %v4011_v61, %v4013_v4 }
 0x247   :  { %v4018_v12 = vpop.f32.mrf.mxu1 }
 0x248   :  { %619 = vmax.xlane.f32.xlu1 %v618_v7  ;;  %v1015_v14 = vpop.trf.xlu0  ;;  %v1046_v7 = vpop.trf.xlu1 }
 0x249   :  { %v4020_v17 = vpop.f32.mrf.mxu1  ;;  %3187 = vmatprep.mubr.msk.f32.mxu0 %vm214_vm2, %v1015_v14 }
 0x24a   :  { %v621_v19 = vmax.f32 %v4018_v12, %v4020_v17 }
 0x24b   :  { %v4025_v22 = vpop.f32.mrf.mxu1 }
 0x24c   :  { %622 = vmax.xlane.f32.xlu0 %v621_v19  ;;  %v1016_v26 = vpop.trf.xlu0 }
 0x24d   :  { %v4027_v28 = vpop.f32.mrf.mxu1  ;;  %3188 = vmatmul.mubr.msk.f32.gmra.mxu0 %vm214_vm2, %v1016_v26 }
 0x24e   :  { %v624_v31 = vmax.f32 %v4025_v22, %v4027_v28 }
 0x24f   :  { %v4032_v33 = vpop.f32.mrf.mxu1 }
 0x250   :  { %625 = vmax.xlane.f32.xlu0 %v624_v31  ;;  %v1017_v36 = vpop.trf.xlu0 }
 0x251   :  { %v4034_v38 = vpop.f32.mrf.mxu1  ;;  %3190 = vmatprep.mubr.msk.f32.mxu0 %vm214_vm2, %v1017_v36 }
 0x252   :  { %v627_v40 = vmax.f32 %v4032_v33, %v4034_v38 }
 0x253   :  { %v4039_v45 = vpop.f32.mrf.mxu1 }
 0x254   :  { %628 = vmax.xlane.f32.xlu0 %v627_v40  ;;  %v1018_v47 = vpop.trf.xlu0 }
 0x255   :  { %v4041_v50 = vpop.f32.mrf.mxu1  ;;  %3191 = vmatmul.mubr.msk.f32.gmra.mxu0 %vm214_vm2, %v1018_v47 }
 0x256   :  { %v630_v58 = vmax.f32 %v4039_v45, %v4041_v50 }
 0x257   :  { %v4046_v0 = vpop.f32.mrf.mxu1 }
 0x258   :  { %631 = vmax.xlane.f32.xlu0 %v630_v58  ;;  %v1019_v14 = vpop.trf.xlu0  ;;  %v1047_v58 = vpop.trf.xlu1 }
 0x259   :  { %v4048_v19 = vpop.f32.mrf.mxu1  ;;  %3193 = vmatprep.mubr.msk.f32.mxu0 %vm214_vm2, %v1019_v14 }
 0x25a   :  { %v633_v26 = vmax.f32 %v4046_v0, %v4048_v19 }
 0x25b   :  { %v4053_v31 = vpop.f32.mrf.mxu1 }
 0x25c   :  { %634 = vmax.xlane.f32.xlu0 %v633_v26  ;;  %v1020_v36 = vpop.trf.xlu0  ;;  %v1048_v51 = vpop.trf.xlu1 }
 0x25d   :  { %v4055_v40 = vpop.f32.mrf.mxu1  ;;  %3194 = vmatmul.mubr.msk.f32.gmra.mxu0 %vm214_vm2, %v1020_v36 }
 0x25e   :  { %v636_v47 = vmax.f32 %v4053_v31, %v4055_v40  ;;  %3196 = vmatprep.mubr.msk.f32.mxu0 %vm214_vm2, %v3943_v15 }
 0x25f   :  { %v4062_v3 = vpop.f32.mrf.mxu1 }
 0x260   :  { %637 = vmax.xlane.f32.xlu0 %v636_v47 }
 0x261   :  { %v4064_v14 = vpop.f32.mrf.mxu1  ;;  %3197 = vmatmul.mubr.msk.f32.gmra.mxu0 %vm214_vm2, %v3954_v21 }
 0x262   :  { %v639_v26 = vmax.f32 %v4062_v3, %v4064_v14  ;;  %3199 = vmatprep.mubr.msk.f32.mxu0 %vm214_vm2, %v3968_v29 }
 0x263   :  { %v4072_v36 = vpop.f32.mrf.mxu1 }
 0x264   :  { %640 = vmax.xlane.f32.xlu0 %v639_v26  ;;  %v1049_v26 = vpop.trf.xlu1 }
 0x265   :  { %v4074_v55 = vpop.f32.mrf.mxu1  ;;  %3200 = vmatmul.mubr.msk.f32.gmra.mxu0 %vm214_vm2, %v3979_v35 }
 0x266   :  { %v642_v15 = vmax.f32 %v4072_v36, %v4074_v55  ;;  %3202 = vmatprep.mubr.msk.f32.mxu0 %vm214_vm2, %v3993_v43 }
 0x267   :  { %v4082_v21 = vpop.f32.mrf.mxu1 }
 0x268   :  { %643 = vmax.xlane.f32.xlu0 %v642_v15 }
 0x269   :  { %v4084_v47 = vpop.f32.mrf.mxu1  ;;  %3203 = vmatmul.mubr.msk.f32.gmra.mxu0 %vm214_vm2, %v4004_v49  ;;  %v1050_v49 = vpop.trf.xlu1 }
 0x26a   :  { %v645_v29 = vmax.f32 %v4082_v21, %v4084_v47  ;;  %3205 = vmatprep.mubr.msk.f32.mxu0 %vm214_vm2, %v1043_v10 }
 0x26b   :  { %v4091_v35 = vpop.f32.mrf.mxu1 }
 0x26c   :  { %5078 = vst [vmem:[#allocation9_spill] sm:$0xff] %v4091_v35  ;;  %646 = vmax.xlane.f32.xlu0 %v645_v29 }
 0x26d   :  { %v4093_v54 = vpop.f32.mrf.mxu1  ;;  %3206 = vmatmul.mubr.msk.f32.gmra.mxu0 %vm214_vm2, %v1044_v24 }
 0x26e   :  { %5079 = vst [vmem:[#allocation10_spill] sm:$0xff] %v4093_v54  ;;  %v648_v43 = vmax.f32 %v4091_v35, %v4093_v54  ;;  %3208 = vmatprep.mubr.msk.f32.mxu0 %vm214_vm2, %v1045_v42 }
 0x26f   :  { %v4099_v15 = vpop.f32.mrf.mxu1 }
 0x270   :  { %5080 = vst [vmem:[#allocation11_spill] sm:$0xff] %v4099_v15  ;;  %649 = vmax.xlane.f32.xlu0 %v648_v43  ;;  %v1051_v43 = vpop.trf.xlu1 }
 0x271   :  { %v4101_v52 = vpop.f32.mrf.mxu1  ;;  %3209 = vmatmul.mubr.msk.f32.gmra.mxu0 %vm214_vm2, %v1046_v7 }
 0x272   :  { %5081 = vst [vmem:[#allocation12_spill] sm:$0xff] %v4101_v52  ;;  %v651_v10 = vmax.f32 %v4099_v15, %v4101_v52  ;;  %3211 = vmatprep.mubr.msk.f32.mxu0 %vm214_vm2, %v1047_v58 }
 0x273   :  { %v4107_v29 = vpop.f32.mrf.mxu1 }
 0x274   :  { %5082 = vst [vmem:[#allocation13_spill] sm:$0xff] %v4107_v29  ;;  %652 = vmax.xlane.f32.xlu0 %v651_v10 }
 0x275   :  { %v4109_v24 = vpop.f32.mrf.mxu1  ;;  %3212 = vmatmul.mubr.msk.f32.gmra.mxu0 %vm214_vm2, %v1048_v51  ;;  %v1052_v51 = vpop.trf.xlu1 }
 0x276   :  { %5083 = vst [vmem:[#allocation14_spill] sm:$0xff] %v4109_v24  ;;  %v654_v42 = vmax.f32 %v4107_v29, %v4109_v24  ;;  %3214 = vmatprep.mubr.msk.f32.mxu0 %vm214_vm2, %v1049_v26 }
 0x277   :  { %v4115_v54 = vpop.f32.mrf.mxu1 }
 0x278   :  { %5084 = vst [vmem:[#allocation15_spill] sm:$0xff] %v4115_v54  ;;  %655 = vmax.xlane.f32.xlu0 %v654_v42 }
 0x279   :  { %v4117_v7 = vpop.f32.mrf.mxu1  ;;  %3215 = vmatmul.mubr.msk.f32.gmra.mxu0 %vm214_vm2, %v1050_v49 }
 0x27a   :  { %5085 = vst [vmem:[#allocation16_spill] sm:$0xff] %v4117_v7  ;;  %v657_v58 = vmax.f32 %v4115_v54, %v4117_v7  ;;  %3217 = vmatprep.mubr.msk.f32.mxu0 %vm214_vm2, %v1051_v43 }
 0x27b   :  { %v4123_v10 = vpop.f32.mrf.mxu1 }
 0x27c   :  { %5086 = vst [vmem:[#allocation17_spill] sm:$0xff] %v4123_v10  ;;  %658 = vmax.xlane.f32.xlu0 %v657_v58 }
 0x27d   :  { %v4125_v24 = vpop.f32.mrf.mxu1  ;;  %3218 = vmatmul.mubr.msk.f32.gmra.mxu0 %vm214_vm2, %v1052_v51 }
 0x27e   :  { %5087 = vst [vmem:[#allocation18_spill] sm:$0xff] %v4125_v24  ;;  %v660_v26 = vmax.f32 %v4123_v10, %v4125_v24 }
 0x27f   :  { %v4130_v42 = vpop.f32.mrf.mxu1 }
 0x280   :  { %5088 = vst [vmem:[#allocation19_spill] sm:$0xff] %v4130_v42  ;;  %661 = vmax.xlane.f32.xlu0 %v660_v26 }
 0x281   :  { %v4132_v49 = vpop.f32.mrf.mxu1 }
 0x282   :  { %5089 = vst [vmem:[#allocation20_spill] sm:$0xff] %v4132_v49  ;;  %v663_v7 = vmax.f32 %v4130_v42, %v4132_v49 }
 0x283   :  { %v4136_v43 = vpop.f32.mrf.mxu1 }
 0x284   :  { %664 = vmax.xlane.f32.xlu0 %v663_v7 }
 0x285   :  { %v4138_v58 = vpop.f32.mrf.mxu1 }
 0x286   :  { %5090 = vst [vmem:[#allocation21_spill] sm:$0xff] %v4138_v58  ;;  %v666_v54 = vmax.f32 %v4136_v43, %v4138_v58 }
 0x288   :  { %667 = vmax.xlane.f32.xlu0 %v666_v54 }
 0x295   :  { %v575_v51 = vpop.xlane.xlu1 %574 }
 0x296   :  { %v669_v24 = vsub.f32 %v3900_v56, %v575_v51  ;;  %v670_v10 = vsub.f32 %v3902_v57, %v575_v51 }
 0x298   :  { %v733_v26 = vmul.f32 1.442695, %v669_v24  ;;  %v735_v29 = vmul.f32 1.442695, %v670_v10 }
 0x299   :  { %v578_v52 = vpop.xlane.xlu0 %577 }
 0x29a   :  { %3351 = vpow2.f32 %v733_v26  ;;  %v671_v49 = vsub.f32 %v3906_v59, %v578_v52  ;;  %v672_v42 = vsub.f32 %v3908_v60, %v578_v52 }
 0x29b   :  { %3353 = vpow2.f32 %v735_v29 }
 0x29c   :  { %v737_v7 = vmul.f32 1.442695, %v671_v49  ;;  %v739_v15 = vmul.f32 1.442695, %v672_v42 }
 0x29d   :  { %v581_v35 = vpop.xlane.xlu0 %580 }
 0x29e   :  { %3355 = vpow2.f32 %v737_v7  ;;  %v673_v54 = vsub.f32 %v3912_v62, %v581_v35  ;;  %v674_v58 = vsub.f32 %v3914_v63, %v581_v35 }
 0x29f   :  { %3357 = vpow2.f32 %v739_v15 }
 0x2a0   :  { %v741_v56 = vmul.f32 1.442695, %v673_v54  ;;  %v743_v57 = vmul.f32 1.442695, %v674_v58 }
 0x2a1   :  { %v584_v24 = vpop.xlane.xlu0 %583 }
 0x2a2   :  { %3359 = vpow2.f32 %v741_v56  ;;  %v675_v10 = vsub.f32 %v3918_v1, %v584_v24  ;;  %v676_v59 = vsub.f32 %v3920_v2, %v584_v24 }
 0x2a3   :  { %3361 = vpow2.f32 %v743_v57 }
 0x2a4   :  { %v745_v52 = vmul.f32 1.442695, %v675_v10  ;;  %v747_v60 = vmul.f32 1.442695, %v676_v59 }
 0x2a5   :  { %v587_v29 = vpop.xlane.xlu0 %586 }
 0x2a6   :  { %3363 = vpow2.f32 %v745_v52  ;;  %v677_v42 = vsub.f32 %v3924_v5, %v587_v29  ;;  %v678_v62 = vsub.f32 %v3926_v6, %v587_v29 }
 0x2a7   :  { %v4152_v49 = vpop.eup %3351  ;;  %3365 = vpow2.f32 %v747_v60 }
 0x2a8   :  { %v4154_v63 = vpop.eup %3353  ;;  %v749_v35 = vmul.f32 1.442695, %v677_v42  ;;  %v751_v15 = vmul.f32 1.442695, %v678_v62 }
 0x2a9   :  { %v590_v58 = vpop.xlane.xlu1 %589  ;;  %v861_v1 = vadd.f32 %v4154_v63, %v4152_v49 }
 0x2aa   :  { %3367 = vpow2.f32 %v749_v35  ;;  %v679_v2 = vsub.f32 %v3930_v8, %v590_v58  ;;  %v680_v51 = vsub.f32 %v3932_v9, %v590_v58 }
 0x2ab   :  { %v4160_v26 = vpop.eup %3355  ;;  %3369 = vpow2.f32 %v751_v15  ;;  %862 = vadd.xlane.f32.xlu1 %v861_v1 }
 0x2ac   :  { %v4162_v5 = vpop.eup %3357  ;;  %v753_v6 = vmul.f32 1.442695, %v679_v2  ;;  %v755_v7 = vmul.f32 1.442695, %v680_v51 }
 0x2ad   :  { %v593_v54 = vpop.xlane.xlu1 %592  ;;  %v864_v56 = vadd.f32 %v4162_v5, %v4160_v26 }
 0x2ae   :  { %3371 = vpow2.f32 %v753_v6  ;;  %v681_v57 = vsub.f32 %v3936_v11, %v593_v54  ;;  %v682_v24 = vsub.f32 %v3938_v13, %v593_v54 }
 0x2af   :  { %v4168_v8 = vpop.eup %3359  ;;  %3373 = vpow2.f32 %v755_v7  ;;  %865 = vadd.xlane.f32.xlu1 %v864_v56 }
 0x2b0   :  { %v4170_v9 = vpop.eup %3361  ;;  %v757_v10 = vmul.f32 1.442695, %v681_v57  ;;  %v759_v59 = vmul.f32 1.442695, %v682_v24 }
 0x2b1   :  { %v596_v52 = vpop.xlane.xlu1 %595  ;;  %v867_v60 = vadd.f32 %v4170_v9, %v4168_v8 }
 0x2b2   :  { %3375 = vpow2.f32 %v757_v10  ;;  %v683_v29 = vsub.f32 %v3945_v16, %v596_v52  ;;  %v684_v42 = vsub.f32 %v3947_v18, %v596_v52 }
 0x2b3   :  { %v4176_v11 = vpop.eup %3363  ;;  %3377 = vpow2.f32 %v759_v59  ;;  %868 = vadd.xlane.f32.xlu1 %v867_v60 }
 0x2b4   :  { %v4178_v13 = vpop.eup %3365  ;;  %v761_v62 = vmul.f32 1.442695, %v683_v29  ;;  %v763_v35 = vmul.f32 1.442695, %v684_v42 }
 0x2b5   :  { %v599_v15 = vpop.xlane.xlu1 %598  ;;  %v870_v58 = vadd.f32 %v4178_v13, %v4176_v11 }
 0x2b6   :  { %3379 = vpow2.f32 %v761_v62  ;;  %v685_v1 = vsub.f32 %v3952_v20, %v599_v15  ;;  %v686_v2 = vsub.f32 %v3956_v23, %v599_v15 }
 0x2b7   :  { %v4184_v16 = vpop.eup %3367  ;;  %3381 = vpow2.f32 %v763_v35  ;;  %871 = vadd.xlane.f32.xlu1 %v870_v58 }
 0x2b8   :  { %v4186_v18 = vpop.eup %3369  ;;  %v765_v51 = vmul.f32 1.442695, %v685_v1  ;;  %v767_v6 = vmul.f32 1.442695, %v686_v2 }
 0x2b9   :  { %v602_v7 = vpop.xlane.xlu1 %601  ;;  %v873_v54 = vadd.f32 %v4186_v18, %v4184_v16 }
 0x2ba   :  { %3383 = vpow2.f32 %v765_v51  ;;  %v687_v56 = vsub.f32 %v3961_v25, %v602_v7  ;;  %v688_v57 = vsub.f32 %v3963_v27, %v602_v7 }
 0x2bb   :  { %v4192_v20 = vpop.eup %3371  ;;  %3385 = vpow2.f32 %v767_v6  ;;  %874 = vadd.xlane.f32.xlu1 %v873_v54 }
 0x2bc   :  { %v4194_v23 = vpop.eup %3373  ;;  %v769_v24 = vmul.f32 1.442695, %v687_v56  ;;  %v771_v10 = vmul.f32 1.442695, %v688_v57 }
 0x2bd   :  { %v605_v59 = vpop.xlane.xlu1 %604  ;;  %v876_v52 = vadd.f32 %v4194_v23, %v4192_v20 }
 0x2be   :  { %3387 = vpow2.f32 %v769_v24  ;;  %v689_v60 = vsub.f32 %v3970_v30, %v605_v59  ;;  %v690_v29 = vsub.f32 %v3972_v32, %v605_v59 }
 0x2bf   :  { %v4200_v25 = vpop.eup %3375  ;;  %3389 = vpow2.f32 %v771_v10  ;;  %877 = vadd.xlane.f32.xlu1 %v876_v52 }
 0x2c0   :  { %v4202_v27 = vpop.eup %3377  ;;  %v773_v42 = vmul.f32 1.442695, %v689_v60  ;;  %v775_v62 = vmul.f32 1.442695, %v690_v29 }
 0x2c1   :  { %v608_v35 = vpop.xlane.xlu1 %607  ;;  %v879_v15 = vadd.f32 %v4202_v27, %v4200_v25 }
 0x2c2   :  { %3391 = vpow2.f32 %v773_v42  ;;  %v691_v58 = vsub.f32 %v3977_v34, %v608_v35  ;;  %v692_v1 = vsub.f32 %v3981_v37, %v608_v35 }
 0x2c3   :  { %v4208_v30 = vpop.eup %3379  ;;  %3393 = vpow2.f32 %v775_v62  ;;  %880 = vadd.xlane.f32.xlu1 %v879_v15 }
 0x2c4   :  { %v4210_v32 = vpop.eup %3381  ;;  %v777_v2 = vmul.f32 1.442695, %v691_v58  ;;  %v779_v51 = vmul.f32 1.442695, %v692_v1 }
 0x2c5   :  { %v611_v6 = vpop.xlane.xlu1 %610  ;;  %v882_v7 = vadd.f32 %v4210_v32, %v4208_v30 }
 0x2c6   :  { %3395 = vpow2.f32 %v777_v2  ;;  %v693_v54 = vsub.f32 %v3986_v39, %v611_v6  ;;  %v694_v56 = vsub.f32 %v3988_v41, %v611_v6 }
 0x2c7   :  { %v4216_v34 = vpop.eup %3383  ;;  %3397 = vpow2.f32 %v779_v51  ;;  %883 = vadd.xlane.f32.xlu1 %v882_v7 }
 0x2c8   :  { %v4218_v37 = vpop.eup %3385  ;;  %v781_v57 = vmul.f32 1.442695, %v693_v54  ;;  %v783_v24 = vmul.f32 1.442695, %v694_v56 }
 0x2c9   :  { %v614_v10 = vpop.xlane.xlu1 %613  ;;  %v885_v59 = vadd.f32 %v4218_v37, %v4216_v34 }
 0x2ca   :  { %3399 = vpow2.f32 %v781_v57  ;;  %v695_v52 = vsub.f32 %v3995_v44, %v614_v10  ;;  %v696_v60 = vsub.f32 %v3997_v46, %v614_v10 }
 0x2cb   :  { %v4224_v39 = vpop.eup %3387  ;;  %3401 = vpow2.f32 %v783_v24  ;;  %886 = vadd.xlane.f32.xlu1 %v885_v59 }
 0x2cc   :  { %v4226_v41 = vpop.eup %3389  ;;  %v785_v29 = vmul.f32 1.442695, %v695_v52  ;;  %v787_v42 = vmul.f32 1.442695, %v696_v60 }
 0x2cd   :  { %v617_v62 = vpop.xlane.xlu1 %616  ;;  %v888_v35 = vadd.f32 %v4226_v41, %v4224_v39 }
 0x2ce   :  { %3403 = vpow2.f32 %v785_v29  ;;  %v697_v15 = vsub.f32 %v4002_v48, %v617_v62  ;;  %v698_v58 = vsub.f32 %v4006_v53, %v617_v62 }
 0x2cf   :  { %v4232_v44 = vpop.eup %3391  ;;  %3405 = vpow2.f32 %v787_v42  ;;  %889 = vadd.xlane.f32.xlu1 %v888_v35 }
 0x2d0   :  { %v4234_v46 = vpop.eup %3393  ;;  %v789_v1 = vmul.f32 1.442695, %v697_v15  ;;  %v791_v2 = vmul.f32 1.442695, %v698_v58 }
 0x2d1   :  { %v620_v51 = vpop.xlane.xlu1 %619  ;;  %v891_v6 = vadd.f32 %v4234_v46, %v4232_v44 }
 0x2d2   :  { %3407 = vpow2.f32 %v789_v1  ;;  %v699_v7 = vsub.f32 %v4011_v61, %v620_v51  ;;  %v700_v54 = vsub.f32 %v4013_v4, %v620_v51 }
 0x2d3   :  { %v4240_v48 = vpop.eup %3395  ;;  %3409 = vpow2.f32 %v791_v2  ;;  %892 = vadd.xlane.f32.xlu1 %v891_v6 }
 0x2d4   :  { %v4242_v53 = vpop.eup %3397  ;;  %v793_v56 = vmul.f32 1.442695, %v699_v7  ;;  %v795_v57 = vmul.f32 1.442695, %v700_v54 }
 0x2d5   :  { %v623_v24 = vpop.xlane.xlu0 %622  ;;  %v894_v10 = vadd.f32 %v4242_v53, %v4240_v48 }
 0x2d6   :  { %3411 = vpow2.f32 %v793_v56  ;;  %v701_v59 = vsub.f32 %v4018_v12, %v623_v24  ;;  %v702_v52 = vsub.f32 %v4020_v17, %v623_v24 }
 0x2d7   :  { %v4248_v61 = vpop.eup %3399  ;;  %3413 = vpow2.f32 %v795_v57  ;;  %895 = vadd.xlane.f32.xlu1 %v894_v10 }
 0x2d8   :  { %v3402_v4 = vpop.eup %3401  ;;  %v797_v60 = vmul.f32 1.442695, %v701_v59  ;;  %v799_v29 = vmul.f32 1.442695, %v702_v52 }
 0x2d9   :  { %v626_v42 = vpop.xlane.xlu0 %625  ;;  %v897_v62 = vadd.f32 %v3402_v4, %v4248_v61 }
 0x2da   :  { %3415 = vpow2.f32 %v797_v60  ;;  %v703_v35 = vsub.f32 %v4025_v22, %v626_v42  ;;  %v704_v15 = vsub.f32 %v4027_v28, %v626_v42 }
 0x2db   :  { %v3404_v58 = vpop.eup %3403  ;;  %3417 = vpow2.f32 %v799_v29  ;;  %898 = vadd.xlane.f32.xlu1 %v897_v62 }
 0x2dc   :  { %v3406_v12 = vpop.eup %3405  ;;  %v801_v17 = vmul.f32 1.442695, %v703_v35  ;;  %v803_v1 = vmul.f32 1.442695, %v704_v15 }
 0x2dd   :  { %v629_v2 = vpop.xlane.xlu0 %628  ;;  %v900_v51 = vadd.f32 %v3406_v12, %v3404_v58 }
 0x2de   :  { %3419 = vpow2.f32 %v801_v17  ;;  %v705_v6 = vsub.f32 %v4032_v33, %v629_v2  ;;  %v706_v7 = vsub.f32 %v4034_v38, %v629_v2 }
 0x2df   :  { %v3408_v54 = vpop.eup %3407  ;;  %3421 = vpow2.f32 %v803_v1  ;;  %901 = vadd.xlane.f32.xlu1 %v900_v51 }
 0x2e0   :  { %v3410_v56 = vpop.eup %3409  ;;  %v805_v22 = vmul.f32 1.442695, %v705_v6  ;;  %v807_v57 = vmul.f32 1.442695, %v706_v7 }
 0x2e1   :  { %v632_v28 = vpop.xlane.xlu0 %631  ;;  %v903_v24 = vadd.f32 %v3410_v56, %v3408_v54 }
 0x2e2   :  { %3423 = vpow2.f32 %v805_v22  ;;  %v707_v10 = vsub.f32 %v4039_v45, %v632_v28  ;;  %v708_v59 = vsub.f32 %v4041_v50, %v632_v28 }
 0x2e3   :  { %v3412_v52 = vpop.eup %3411  ;;  %3425 = vpow2.f32 %v807_v57  ;;  %904 = vadd.xlane.f32.xlu1 %v903_v24 }
 0x2e4   :  { %v3414_v60 = vpop.eup %3413  ;;  %v809_v33 = vmul.f32 1.442695, %v707_v10  ;;  %v811_v29 = vmul.f32 1.442695, %v708_v59  ;;  %v5092_v59 = vld [vmem:[#allocation10_spill] sm:$0xff] }
 0x2e5   :  { %1473 = vmatprep.subr.mxu0 %v3414_v60  ;;  %v635_v38 = vpop.xlane.xlu0 %634  ;;  %v906_v42 = vadd.f32 %v3414_v60, %v3412_v52 }
 0x2e6   :  { %3427 = vpow2.f32 %v809_v33  ;;  %v709_v62 = vsub.f32 %v4046_v0, %v635_v38  ;;  %v710_v35 = vsub.f32 %v4048_v19, %v635_v38  ;;  %1474 = vmatpush1.msra.mxu0 %v3412_v52 }
 0x2e7   :  { %v4259_v15 = vpop.eup %3415  ;;  %3429 = vpow2.f32 %v811_v29  ;;  %907 = vadd.xlane.f32.xlu1 %v906_v42  ;;  %1475 = vmatprep.subr.mxu0 %v3410_v56  ;;  %v5094_v42 = vld [vmem:[#allocation12_spill] sm:$0xff] }
 0x2e8   :  { %v4261_v45 = vpop.eup %3417  ;;  %v813_v50 = vmul.f32 1.442695, %v709_v62  ;;  %v815_v17 = vmul.f32 1.442695, %v710_v35  ;;  %1476 = vmatpush1.msra.mxu0 %v3408_v54 }
 0x2e9   :  { %1477 = vmatprep.subr.mxu0 %v3406_v12  ;;  %v638_v1 = vpop.xlane.xlu0 %637  ;;  %v909_v2 = vadd.f32 %v4261_v45, %v4259_v15 }
 0x2ea   :  { %3431 = vpow2.f32 %v813_v50  ;;  %v711_v0 = vsub.f32 %v4053_v31, %v638_v1  ;;  %v712_v19 = vsub.f32 %v4055_v40, %v638_v1  ;;  %1478 = vmatpush1.msra.mxu0 %v3404_v58 }
 0x2eb   :  { %v4267_v51 = vpop.eup %3419  ;;  %3433 = vpow2.f32 %v815_v17  ;;  %910 = vadd.xlane.f32.xlu0 %v909_v2  ;;  %1479 = vmatprep.subr.mxu0 %v3402_v4  ;;  %v5096_v2 = vld [vmem:[#allocation14_spill] sm:$0xff] }
 0x2ec   :  { %v4269_v6 = vpop.eup %3421  ;;  %v817_v7 = vmul.f32 1.442695, %v711_v0  ;;  %v819_v54 = vmul.f32 1.442695, %v712_v19  ;;  %1480 = vmatpush1.msra.mxu0 %v4248_v61 }
 0x2ed   :  { %1481 = vmatprep.subr.mxu0 %v4242_v53  ;;  %v641_v12 = vpop.xlane.xlu0 %640  ;;  %v912_v31 = vadd.f32 %v4269_v6, %v4267_v51 }
 0x2ee   :  { %3435 = vpow2.f32 %v817_v7  ;;  %v713_v40 = vsub.f32 %v4062_v3, %v641_v12  ;;  %v714_v58 = vsub.f32 %v4064_v14, %v641_v12  ;;  %1482 = vmatpush1.msra.mxu0 %v4240_v48  ;;  %v5097_v12 = vld [vmem:[#allocation15_spill] sm:$0xff] }
 0x2ef   :  { %v4278_v4 = vpop.eup %3423  ;;  %3437 = vpow2.f32 %v819_v54  ;;  %913 = vadd.xlane.f32.xlu0 %v912_v31  ;;  %1483 = vmatprep.subr.mxu0 %v4234_v46 }
 0x2f0   :  { %v4281_v61 = vpop.eup %3425  ;;  %v821_v53 = vmul.f32 1.442695, %v713_v40  ;;  %v823_v56 = vmul.f32 1.442695, %v714_v58  ;;  %1484 = vmatpush1.msra.mxu0 %v4232_v44 }
 0x2f1   :  { %1485 = vmatprep.subr.mxu0 %v4226_v41  ;;  %v644_v22 = vpop.xlane.xlu0 %643  ;;  %v915_v3 = vadd.f32 %v4281_v61, %v4278_v4 }
 0x2f2   :  { %3439 = vpow2.f32 %v821_v53  ;;  %v715_v14 = vsub.f32 %v4072_v36, %v644_v22  ;;  %v716_v48 = vsub.f32 %v4074_v55, %v644_v22  ;;  %1486 = vmatpush1.msra.mxu0 %v4224_v39 }
 0x2f3   :  { %v4290_v46 = vpop.eup %3427  ;;  %3441 = vpow2.f32 %v823_v56  ;;  %916 = vadd.xlane.f32.xlu0 %v915_v3  ;;  %1487 = vmatprep.subr.mxu0 %v4218_v37  ;;  %v5099_v3 = vld [vmem:[#allocation17_spill] sm:$0xff] }
 0x2f4   :  { %v4293_v44 = vpop.eup %3429  ;;  %v825_v41 = vmul.f32 1.442695, %v715_v14  ;;  %v827_v57 = vmul.f32 1.442695, %v716_v48  ;;  %1488 = vmatpush1.msra.mxu0 %v4216_v34  ;;  %v5100_v48 = vld [vmem:[#allocation18_spill] sm:$0xff] }
 0x2f5   :  { %1489 = vmatprep.subr.mxu0 %v4210_v32  ;;  %v647_v28 = vpop.xlane.xlu0 %646  ;;  %v918_v55 = vadd.f32 %v4293_v44, %v4290_v46 }
 0x2f6   :  { %3443 = vpow2.f32 %v825_v41  ;;  %v717_v36 = vsub.f32 %v4082_v21, %v647_v28  ;;  %v718_v39 = vsub.f32 %v4084_v47, %v647_v28  ;;  %1490 = vmatpush1.msra.mxu0 %v4208_v30  ;;  %v5091_v47 = vld [vmem:[#allocation9_spill] sm:$0xff] }
 0x2f7   :  { %v4302_v37 = vpop.eup %3431  ;;  %3445 = vpow2.f32 %v827_v57  ;;  %919 = vadd.xlane.f32.xlu0 %v918_v55  ;;  %1491 = vmatprep.subr.mxu0 %v4202_v27 }
 0x2f8   :  { %v4305_v34 = vpop.eup %3433  ;;  %v829_v32 = vmul.f32 1.442695, %v717_v36  ;;  %v831_v24 = vmul.f32 1.442695, %v718_v39  ;;  %1492 = vmatpush1.msra.mxu0 %v4200_v25 }
 0x2f9   :  { %1493 = vmatprep.subr.mxu0 %v4194_v23  ;;  %v650_v10 = vpop.xlane.xlu0 %649  ;;  %v921_v21 = vadd.f32 %v4305_v34, %v4302_v37 }
 0x2fa   :  { %3447 = vpow2.f32 %v829_v32  ;;  %v719_v30 = vsub.f32 %v5091_v47, %v650_v10  ;;  %v720_v52 = vsub.f32 %v5092_v59, %v650_v10  ;;  %1494 = vmatpush1.msra.mxu0 %v4192_v20  ;;  %v5093_v20 = vld [vmem:[#allocation11_spill] sm:$0xff] }
 0x2fb   :  { %v4314_v27 = vpop.eup %3435  ;;  %3449 = vpow2.f32 %v831_v24  ;;  %922 = vadd.xlane.f32.xlu0 %v921_v21  ;;  %1495 = vmatprep.subr.mxu0 %v4186_v18  ;;  %v5101_v24 = vld [vmem:[#allocation19_spill] sm:$0xff]  ;;  %v5102_v21 = vld [vmem:[#allocation20_spill] sm:$0xff] }
 0x2fc   :  { %v4317_v25 = vpop.eup %3437  ;;  %v833_v23 = vmul.f32 1.442695, %v719_v30  ;;  %v835_v60 = vmul.f32 1.442695, %v720_v52  ;;  %1496 = vmatpush1.msra.mxu0 %v4184_v16 }
 0x2fd   :  { %1497 = vmatprep.subr.mxu0 %v4178_v13  ;;  %v653_v33 = vpop.xlane.xlu0 %652  ;;  %v924_v29 = vadd.f32 %v4317_v25, %v4314_v27 }
 0x2fe   :  { %3451 = vpow2.f32 %v833_v23  ;;  %v721_v38 = vsub.f32 %v5093_v20, %v653_v33  ;;  %v722_v62 = vsub.f32 %v5094_v42, %v653_v33  ;;  %1498 = vmatpush1.msra.mxu0 %v4176_v11  ;;  %v5095_v11 = vld [vmem:[#allocation13_spill] sm:$0xff] }
 0x2ff   :  { %v4326_v18 = vpop.eup %3439  ;;  %3453 = vpow2.f32 %v835_v60  ;;  %925 = vadd.xlane.f32.xlu0 %v924_v29  ;;  %1499 = vmatprep.subr.mxu0 %v4170_v9  ;;  %v5103_v20 = vld [vmem:[#allocation21_spill] sm:$0xff] }
 0x300   :  { %v4329_v16 = vpop.eup %3441  ;;  %v837_v13 = vmul.f32 1.442695, %v721_v38  ;;  %v839_v35 = vmul.f32 1.442695, %v722_v62  ;;  %1500 = vmatpush1.msra.mxu0 %v4168_v8 }
 0x301   :  { %1501 = vmatprep.subr.mxu0 %v4162_v5  ;;  %v656_v50 = vpop.xlane.xlu0 %655  ;;  %v927_v17 = vadd.f32 %v4329_v16, %v4326_v18 }
 0x302   :  { %3455 = vpow2.f32 %v837_v13  ;;  %v723_v1 = vsub.f32 %v5095_v11, %v656_v50  ;;  %v724_v0 = vsub.f32 %v5096_v2, %v656_v50  ;;  %1502 = vmatpush1.msra.mxu0 %v4160_v26  ;;  %v5098_v26 = vld [vmem:[#allocation16_spill] sm:$0xff] }
 0x303   :  { %v4338_v9 = vpop.eup %3443  ;;  %3457 = vpow2.f32 %v839_v35  ;;  %928 = vadd.xlane.f32.xlu0 %v927_v17  ;;  %1503 = vmatprep.subr.mxu0 %v4154_v63 }
 0x304   :  { %v4341_v8 = vpop.eup %3445  ;;  %v841_v5 = vmul.f32 1.442695, %v723_v1  ;;  %v843_v19 = vmul.f32 1.442695, %v724_v0  ;;  %1504 = vmatpush1.msra.mxu0 %v4152_v49 }
 0x305   :  { %v659_v7 = vpop.xlane.xlu0 %658  ;;  %v930_v54 = vadd.f32 %v4341_v8, %v4338_v9 }
 0x306   :  { %3459 = vpow2.f32 %v841_v5  ;;  %v725_v31 = vsub.f32 %v5097_v12, %v659_v7  ;;  %v726_v40 = vsub.f32 %v5098_v26, %v659_v7  ;;  %v24_v26 = vld [vmem:[%s5038_s2 + $0x10] sm:$0xff] }
 0x307   :  { %v4348_v58 = vpop.eup %3447  ;;  %3461 = vpow2.f32 %v843_v19  ;;  %931 = vadd.xlane.f32.xlu0 %v930_v54 }
 0x308   :  { %v4350_v63 = vpop.eup %3449  ;;  %v845_v53 = vmul.f32 1.442695, %v725_v31  ;;  %v847_v56 = vmul.f32 1.442695, %v726_v40 }
 0x309   :  { %v662_v22 = vpop.xlane.xlu0 %661  ;;  %v933_v49 = vadd.f32 %v4350_v63, %v4348_v58 }
 0x30a   :  { %3463 = vpow2.f32 %v845_v53  ;;  %v727_v14 = vsub.f32 %v5099_v3, %v662_v22  ;;  %v728_v41 = vsub.f32 %v5100_v48, %v662_v22 }
 0x30b   :  { %v3452_v57 = vpop.eup %3451  ;;  %3465 = vpow2.f32 %v847_v56  ;;  %934 = vadd.xlane.f32.xlu0 %v933_v49 }
 0x30c   :  { %v3454_v28 = vpop.eup %3453  ;;  %v849_v55 = vmul.f32 1.442695, %v727_v14  ;;  %v851_v36 = vmul.f32 1.442695, %v728_v41 }
 0x30d   :  { %v665_v39 = vpop.xlane.xlu0 %664  ;;  %v936_v32 = vadd.f32 %v3454_v28, %v3452_v57 }
 0x30e   :  { %3467 = vpow2.f32 %v849_v55  ;;  %v729_v10 = vsub.f32 %v5101_v24, %v665_v39  ;;  %v730_v47 = vsub.f32 %v5102_v21, %v665_v39 }
 0x30f   :  { %v3456_v30 = vpop.eup %3455  ;;  %3469 = vpow2.f32 %v851_v36  ;;  %937 = vadd.xlane.f32.xlu0 %v936_v32 }
 0x310   :  { %v3458_v59 = vpop.eup %3457  ;;  %v853_v52 = vmul.f32 1.442695, %v729_v10  ;;  %v855_v23 = vmul.f32 1.442695, %v730_v47 }
 0x311   :  { %v668_v60 = vpop.xlane.xlu0 %667  ;;  %v939_v33 = vadd.f32 %v3458_v59, %v3456_v30 }
 0x312   :  { %3471 = vpow2.f32 %v853_v52  ;;  %v731_v29 = vsub.f32 %v4136_v43, %v668_v60  ;;  %v732_v38 = vsub.f32 %v5103_v20, %v668_v60 }
 0x313   :  { %v3460_v42 = vpop.eup %3459  ;;  %3473 = vpow2.f32 %v855_v23  ;;  %940 = vadd.xlane.f32.xlu0 %v939_v33 }
 0x314   :  { %v3462_v62 = vpop.eup %3461  ;;  %v857_v13 = vmul.f32 1.442695, %v731_v29  ;;  %v859_v35 = vmul.f32 1.442695, %v732_v38 }
 0x315   :  { %v942_v50 = vadd.f32 %v3462_v62, %v3460_v42 }
 0x316   :  { %3475 = vpow2.f32 %v857_v13 }
 0x317   :  { %v3464_v17 = vpop.eup %3463  ;;  %3477 = vpow2.f32 %v859_v35  ;;  %943 = vadd.xlane.f32.xlu0 %v942_v50 }
 0x318   :  { %v3466_v11 = vpop.eup %3465 }
 0x319   :  { %v945_v1 = vadd.f32 %v3466_v11, %v3464_v17 }
 0x31b   :  { %v3468_v2 = vpop.eup %3467  ;;  %946 = vadd.xlane.f32.xlu0 %v945_v1 }
 0x31c   :  { %v3470_v0 = vpop.eup %3469 }
 0x31d   :  { %v948_v5 = vadd.f32 %v3470_v0, %v3468_v2 }
 0x31f   :  { %v3472_v43 = vpop.eup %3471  ;;  %949 = vadd.xlane.f32.xlu0 %v948_v5 }
 0x320   :  { %v3474_v19 = vpop.eup %3473 }
 0x321   :  { %v951_v7 = vadd.f32 %v3474_v19, %v3472_v43 }
 0x323   :  { %v3476_v54 = vpop.eup %3475  ;;  %952 = vadd.xlane.f32.xlu0 %v951_v7 }
 0x324   :  { %v3478_v12 = vpop.eup %3477 }
 0x325   :  { %1505 = vmatprep.subr.mxu0 %v3478_v12  ;;  %v954_v31 = vadd.f32 %v3478_v12, %v3476_v54 }
 0x326   :  { %1506 = vmatpush2.msra.mxu0 %v3476_v54 }
 0x327   :  { %955 = vadd.xlane.f32.xlu0 %v954_v31  ;;  %1507 = vmatprep.subr.mxu0 %v3474_v19 }
 0x328   :  { %1508 = vmatpush2.msra.mxu0 %v3472_v43 }
 0x329   :  { %1509 = vmatprep.subr.mxu0 %v3470_v0 }
 0x32a   :  { %1510 = vmatpush2.msra.mxu0 %v3468_v2 }
 0x32b   :  { %1511 = vmatprep.subr.mxu0 %v3466_v11 }
 0x32c   :  { %1512 = vmatpush2.msra.mxu0 %v3464_v17 }
 0x32d   :  { %1513 = vmatprep.subr.mxu0 %v3462_v62 }
 0x32e   :  { %1514 = vmatpush2.msra.mxu0 %v3460_v42 }
 0x32f   :  { %1515 = vmatprep.subr.mxu0 %v3458_v59 }
 0x330   :  { %1516 = vmatpush2.msra.mxu0 %v3456_v30 }
 0x331   :  { %1517 = vmatprep.subr.mxu0 %v3454_v28 }
 0x332   :  { %1518 = vmatpush2.msra.mxu0 %v3452_v57 }
 0x333   :  { %1519 = vmatprep.subr.mxu0 %v4350_v63 }
 0x334   :  { %1520 = vmatpush2.msra.mxu0 %v4348_v58 }
 0x335   :  { %1521 = vmatprep.subr.mxu0 %v4341_v8 }
 0x336   :  { %1522 = vmatpush2.msra.mxu0 %v4338_v9 }
 0x337   :  { %1523 = vmatprep.subr.mxu0 %v4329_v16 }
 0x338   :  { %1524 = vmatpush2.msra.mxu0 %v4326_v18 }
 0x339   :  { %1525 = vmatprep.subr.mxu0 %v4317_v25 }
 0x33a   :  { %1526 = vmatpush2.msra.mxu0 %v4314_v27  ;;  %v5104_v27 = vld [vmem:[#allocation6_spill] sm:$0xff] }
 0x33b   :  { %1527 = vmatprep.subr.mxu0 %v4305_v34  ;;  %v1611_v25 = vrot.slane %v5104_v27, 4 }
 0x33c   :  { %1528 = vmatpush2.msra.mxu0 %v4302_v37  ;;  %v3174_v37 = vpop.f32.mrf.mxu0 }
 0x33d   :  { %37 = vperm.xlu0 %3275, %v24_v26   ;;  %1529 = vmatprep.subr.mxu0 %v4293_v44 }
 0x33e   :  { %1530 = vmatpush2.msra.mxu0 %v4290_v46  ;;  %v1218_v44 = vpop.f32.mrf.mxu0  ;;  %v863_v46 = vpop.xlane.xlu1 %862 }
 0x33f   :  { %1531 = vmatprep.subr.mxu0 %v4281_v61  ;;  %3479 = vrcp.f32 %v863_v46 }
 0x340   :  { %1532 = vmatpush2.msra.mxu0 %v4278_v4  ;;  %v4383_v34 = vpop.f32.mrf.mxu0 }
 0x341   :  { %1533 = vmatprep.subr.mxu0 %v4269_v6 }
 0x342   :  { %1534 = vmatpush2.msra.mxu0 %v4267_v51  ;;  %v1228_v61 = vpop.f32.mrf.mxu0  ;;  %v866_v4 = vpop.xlane.xlu1 %865 }
 0x343   :  { %1535 = vmatprep.subr.mxu0 %v4261_v45 }
 0x344   :  { %1536 = vmatpush2.msra.mxu0 %v4259_v15  ;;  %v4385_v18 = vpop.f32.mrf.mxu0 }
 0x345   :  { %3037 = vmatprep.subr.msk.mxu0 %vm311_vm1, %v1611_v25 }
 0x346   :  { %v4387_v6 = vpop.f32.mrf.mxu0  ;;  %v869_v16 = vpop.xlane.xlu1 %868 }
 0x348   :  { %v4389_v51 = vpop.f32.mrf.mxu0 }
 0x34a   :  { %v4391_v9 = vpop.f32.mrf.mxu0  ;;  %v872_v15 = vpop.xlane.xlu1 %871 }
 0x34c   :  { %v4393_v45 = vpop.f32.mrf.mxu0  ;;  %v3480_v36 = vpop.eup %3479 }
 0x34d   :  { %v1377_v21 = vmul.f32 %v3480_v36, %v1218_v44 }
 0x34e   :  { %v4395_v8 = vpop.f32.mrf.mxu0  ;;  %v875_v58 = vpop.xlane.xlu1 %874 }
 0x350   :  { %v4397_v40 = vpop.f32.mrf.mxu0 }
 0x352   :  { %v4399_v63 = vpop.f32.mrf.mxu0  ;;  %v878_v56 = vpop.xlane.xlu1 %877 }
 0x354   :  { %v4401_v53 = vpop.f32.mrf.mxu0 }
 0x356   :  { %v4403_v22 = vpop.f32.mrf.mxu0  ;;  %v881_v14 = vpop.xlane.xlu1 %880 }
 0x358   :  { %v4405_v3 = vpop.f32.mrf.mxu0 }
 0x35a   :  { %v4407_v41 = vpop.f32.mrf.mxu0  ;;  %v884_v28 = vpop.xlane.xlu1 %883 }
 0x35c   :  { %v3198_v57 = vpop.f32.mrf.mxu0 }
 0x35e   :  { %v1298_v32 = vpop.f32.mrf.mxu0  ;;  %v887_v10 = vpop.xlane.xlu1 %886 }
 0x360   :  { %v3201_v30 = vpop.f32.mrf.mxu0 }
 0x362   :  { %v1308_v20 = vpop.f32.mrf.mxu0  ;;  %v890_v42 = vpop.xlane.xlu1 %889 }
 0x364   :  { %v3204_v2 = vpop.f32.mrf.mxu0 }
 0x366   :  { %v893_v43 = vpop.xlane.xlu1 %892  ;;  %v1318_v31 = vpop.f32.mrf.mxu0 }
 0x368   :  { %v3207_v44 = vpop.f32.mrf.mxu0 }
 0x374   :  { %v911_v49 = vpop.xlane.xlu0 %910 }
 0x375   :  { %3481 = vrcp.f32 %v911_v49 }
 0x376   :  { %3483 = vrcp.f32 %v866_v4 }
 0x378   :  { %v914_v48 = vpop.xlane.xlu0 %913 }
 0x379   :  { %3485 = vrcp.f32 %v914_v48 }
 0x37a   :  { %3487 = vrcp.f32 %v869_v16 }
 0x37c   :  { %v917_v55 = vpop.xlane.xlu0 %916 }
 0x37d   :  { %3489 = vrcp.f32 %v917_v55 }
 0x37e   :  { %3491 = vrcp.f32 %v872_v15 }
 0x380   :  { %v920_v39 = vpop.xlane.xlu0 %919 }
 0x381   :  { %3493 = vrcp.f32 %v920_v39 }
 0x382   :  { %v3482_v24 = vpop.eup %3481  ;;  %3495 = vrcp.f32 %v875_v58 }
 0x383   :  { %v1393_v47 = vmul.f32 %v3482_v24, %v1298_v32  ;;  %v3484_v59 = vpop.eup %3483 }
 0x384   :  { %v923_v52 = vpop.xlane.xlu0 %922  ;;  %v1378_v33 = vmul.f32 %v3484_v59, %v3174_v37 }
 0x385   :  { %v3277_v23 = vpack.i.bf16 %v1377_v21, %v1393_v47  ;;  %3497 = vrcp.f32 %v923_v52 }
 0x386   :  { %v3486_v60 = vpop.eup %3485  ;;  %3499 = vrcp.f32 %v878_v56 }
 0x387   :  { %v1394_v29 = vmul.f32 %v3486_v60, %v3198_v57  ;;  %3278 = vxpose.xlu1.b32.start [1/16] (narrow) %v3277_v23, 8  ;;  %v3488_v38 = vpop.eup %3487 }
 0x388   :  { %v926_v62 = vpop.xlane.xlu0 %925  ;;  %v1379_v50 = vmul.f32 %v3488_v38, %v1228_v61  ;;  %v896_v61 = vpop.xlane.xlu1 %895 }
 0x389   :  { %v3279_v13 = vpack.i.bf16 %v1378_v33, %v1394_v29  ;;  %3501 = vrcp.f32 %v926_v62 }
 0x38a   :  { %v3490_v35 = vpop.eup %3489  ;;  %3503 = vrcp.f32 %v881_v14  ;;  %v1328_v14 = vpop.f32.mrf.mxu0 }
 0x38b   :  { %v1395_v17 = vmul.f32 %v3490_v35, %v1308_v20  ;;  %3280 = vxpose.xlu1.b32.cont [2/16] (narrow) %v3279_v13, 8  ;;  %v3492_v11 = vpop.eup %3491 }
 0x38c   :  { %v929_v1 = vpop.xlane.xlu0 %928  ;;  %v1380_v19 = vmul.f32 %v3492_v11, %v4383_v34  ;;  %v899_v57 = vpop.xlane.xlu1 %898 }
 0x38d   :  { %v3281_v0 = vpack.i.bf16 %v1379_v50, %v1395_v17  ;;  %3505 = vrcp.f32 %v929_v1  ;;  %v3210_v36 = vpop.f32.mrf.mxu0 }
 0x38e   :  { %v3494_v5 = vpop.eup %3493  ;;  %3507 = vrcp.f32 %v884_v28 }
 0x38f   :  { %v1396_v7 = vmul.f32 %v3494_v5, %v3201_v30  ;;  %3282 = vxpose.xlu1.b32.cont [3/16] (narrow) %v3281_v0, 8  ;;  %v3496_v54 = vpop.eup %3495  ;;  %v1338_v47 = vpop.f32.mrf.mxu0 }
 0x390   :  { %v932_v12 = vpop.xlane.xlu0 %931  ;;  %v1381_v25 = vmul.f32 %v3496_v54, %v4387_v6  ;;  %v902_v59 = vpop.xlane.xlu1 %901 }
 0x391   :  { %v3283_v26 = vpack.i.bf16 %v1380_v19, %v1396_v7  ;;  %3509 = vrcp.f32 %v932_v12  ;;  %v3213_v38 = vpop.f32.mrf.mxu0 }
 0x392   :  { %v3498_v27 = vpop.eup %3497  ;;  %3511 = vrcp.f32 %v887_v10 }
 0x393   :  { %v1397_v37 = vmul.f32 %v3498_v27, %v1318_v31  ;;  %3284 = vxpose.xlu1.b32.cont [4/16] (narrow) %v3283_v26, 8  ;;  %v3500_v46 = vpop.eup %3499  ;;  %v1348_v11 = vpop.f32.mrf.mxu0 }
 0x394   :  { %v935_v4 = vpop.xlane.xlu0 %934  ;;  %v1382_v15 = vmul.f32 %v3500_v46, %v4385_v18  ;;  %v905_v62 = vpop.xlane.xlu1 %904 }
 0x395   :  { %v3285_v16 = vpack.i.bf16 %v1381_v25, %v1397_v37  ;;  %3513 = vrcp.f32 %v935_v4  ;;  %v3216_v5 = vpop.f32.mrf.mxu0 }
 0x396   :  { %v3502_v34 = vpop.eup %3501  ;;  %3515 = vrcp.f32 %v890_v42 }
 0x397   :  { %v1398_v58 = vmul.f32 %v3502_v34, %v3204_v2  ;;  %3286 = vxpose.xlu1.b32.cont [5/16] (narrow) %v3285_v16, 8  ;;  %v3504_v56 = vpop.eup %3503  ;;  %v1358_v25 = vpop.f32.mrf.mxu0 }
 0x398   :  { %v938_v49 = vpop.xlane.xlu0 %937  ;;  %v1383_v28 = vmul.f32 %v3504_v56, %v4391_v9  ;;  %v908_v19 = vpop.xlane.xlu1 %907 }
 0x399   :  { %v3287_v48 = vpack.i.bf16 %v1382_v15, %v1398_v58  ;;  %3517 = vrcp.f32 %v938_v49  ;;  %v3219_v4 = vpop.f32.mrf.mxu0 }
 0x39a   :  { %v3506_v6 = vpop.eup %3505  ;;  %3519 = vrcp.f32 %v893_v43 }
 0x39b   :  { %v1399_v55 = vmul.f32 %v3506_v6, %v1328_v14  ;;  %3288 = vxpose.xlu1.b32.cont [6/16] (narrow) %v3287_v48, 8  ;;  %v3508_v39 = vpop.eup %3507  ;;  %v1368_v49 = vpop.f32.mrf.mxu0  ;;  %v5105_v48 = vld [vmem:[#allocation7_spill] sm:$0xff] }
 0x39c   :  { %v941_v32 = vpop.xlane.xlu0 %940  ;;  %v1384_v10 = vmul.f32 %v3508_v39, %v4389_v51 }
 0x39d   :  { %v3289_v24 = vpack.i.bf16 %v1383_v28, %v1399_v55  ;;  %3521 = vrcp.f32 %v941_v32 }
 0x39e   :  { %v3510_v18 = vpop.eup %3509  ;;  %3523 = vrcp.f32 %v896_v61 }
 0x39f   :  { %v1400_v21 = vmul.f32 %v3510_v18, %v3207_v44  ;;  %3290 = vxpose.xlu1.b32.cont [7/16] (narrow) %v3289_v24, 8  ;;  %v3512_v30 = vpop.eup %3511  ;;  %v5106_v24 = vld [vmem:[#allocation8_spill] sm:$0xff] }
 0x3a0   :  { %v944_v52 = vpop.xlane.xlu0 %943  ;;  %v1385_v60 = vmul.f32 %v3512_v30, %v4395_v8 }
 0x3a1   :  { %v3291_v23 = vpack.i.bf16 %v1384_v10, %v1400_v21  ;;  %3525 = vrcp.f32 %v944_v52 }
 0x3a2   :  { %v3514_v9 = vpop.eup %3513  ;;  %3527 = vrcp.f32 %v899_v57 }
 0x3a3   :  { %v1401_v33 = vmul.f32 %v3514_v9, %v1338_v47  ;;  %3292 = vxpose.xlu1.b32.cont [8/16] (narrow) %v3291_v23, 8  ;;  %v3516_v29 = vpop.eup %3515  ;;  %v5108_v23 = vmov 0.0  }
 0x3a4   :  { %v947_v20 = vpop.xlane.xlu0 %946  ;;  %v1386_v13 = vmul.f32 %v3516_v29, %v4393_v45 }
 0x3a5   :  { %v3293_v42 = vpack.i.bf16 %v1385_v60, %v1401_v33  ;;  %3529 = vrcp.f32 %v947_v20 }
 0x3a6   :  { %v3518_v51 = vpop.eup %3517  ;;  %3531 = vrcp.f32 %v902_v59  ;;  %v5107_v59 = vld [vmem:[#allocation5_spill] sm:$0xff] }
 0x3a7   :  { %v1402_v35 = vmul.f32 %v3518_v51, %v3210_v36  ;;  %3294 = vxpose.xlu1.b32.cont [9/16] (narrow) %v3293_v42, 8  ;;  %v3520_v50 = vpop.eup %3519  ;;  %v1610_v52 = vrot.slane %v5107_v59, 4 }
 0x3a8   :  { %v950_v17 = vpop.xlane.xlu0 %949  ;;  %v1387_v2 = vmul.f32 %v3520_v50, %v4399_v63 }
 0x3a9   :  { %v3295_v1 = vpack.i.bf16 %v1386_v13, %v1402_v35  ;;  %3533 = vrcp.f32 %v950_v17 }
 0x3aa   :  { %v3522_v8 = vpop.eup %3521  ;;  %3535 = vrcp.f32 %v905_v62 }
 0x3ab   :  { %v1403_v0 = vmul.f32 %v3522_v8, %v1348_v11  ;;  %3296 = vxpose.xlu1.b32.cont [10/16] (narrow) %v3295_v1, 8  ;;  %v3524_v43 = vpop.eup %3523 }
 0x3ac   :  { %v953_v7 = vpop.xlane.xlu0 %952  ;;  %v1388_v12 = vmul.f32 %v3524_v43, %v4397_v40 }
 0x3ad   :  { %v3297_v54 = vpack.i.bf16 %v1387_v2, %v1403_v0  ;;  %3537 = vrcp.f32 %v953_v7 }
 0x3ae   :  { %v3526_v45 = vpop.eup %3525  ;;  %3539 = vrcp.f32 %v908_v19 }
 0x3af   :  { %v1404_v31 = vmul.f32 %v3526_v45, %v3213_v38  ;;  %3298 = vxpose.xlu1.b32.cont [11/16] (narrow) %v3297_v54, 8  ;;  %v3528_v26 = vpop.eup %3527 }
 0x3b0   :  { %v956_v27 = vpop.xlane.xlu0 %955  ;;  %v1389_v44 = vmul.f32 %v3528_v26, %v4403_v22 }
 0x3b1   :  { %v3299_v37 = vpack.i.bf16 %v1388_v12, %v1404_v31  ;;  %3541 = vrcp.f32 %v956_v27 }
 0x3b2   :  { %v3530_v63 = vpop.eup %3529 }
 0x3b3   :  { %v1405_v46 = vmul.f32 %v3530_v63, %v1358_v25  ;;  %3300 = vxpose.xlu1.b32.cont [12/16] (narrow) %v3299_v37, 8  ;;  %v3532_v61 = vpop.eup %3531 }
 0x3b4   :  { %v1390_v15 = vmul.f32 %v3532_v61, %v4401_v53 }
 0x3b5   :  { %v3301_v16 = vpack.i.bf16 %v1389_v44, %v1405_v46 }
 0x3b6   :  { %v3534_v34 = vpop.eup %3533 }
 0x3b7   :  { %v1406_v40 = vmul.f32 %v3534_v34, %v3216_v5  ;;  %3302 = vxpose.xlu1.b32.cont [13/16] (narrow) %v3301_v16, 8  ;;  %v3536_v58 = vpop.eup %3535 }
 0x3b8   :  { %v38_v56 = vpop.permute.xlu0 %37  ;;  %v1391_v28 = vmul.f32 %v3536_v58, %v4407_v41 }
 0x3b9   :  { %v3303_v14 = vpack.i.bf16 %v1390_v15, %v1406_v40  ;;  %v140_v6 = vadd.f32 %v5105_v48, %v38_v56  ;;  %v142_v18 = vadd.f32 %v5106_v24, %v38_v56 }
 0x3ba   :  { %v3538_v57 = vpop.eup %3537 }
 0x3bb   :  { %v1407_v22 = vmul.f32 %v3538_v57, %v1368_v49  ;;  %1544 = vxpose.xlu0.b32.start.end [1/1] (short) %v140_v6, 128  ;;  %3304 = vxpose.xlu1.b32.cont [14/16] (narrow) %v3303_v14, 8  ;;  %v3540_v55 = vpop.eup %3539  ;;  %v2388_v21 = vrot.slane %v142_v18, 4 }
 0x3bc   :  { %v1392_v32 = vmul.f32 %v3540_v55, %v4405_v3  ;;  %v2387_v3 = vrot.slane %v140_v6, 4 }
 0x3bd   :  { %v3305_v36 = vpack.i.bf16 %v1391_v28, %v1407_v22 }
 0x3be   :  { %v3542_v39 = vpop.eup %3541 }
 0x3bf   :  { %v1408_v53 = vmul.f32 %v3542_v39, %v3219_v4  ;;  %3306 = vxpose.xlu1.b32.cont [15/16] (narrow) %v3305_v36, 8 }
 0x3c1   :  { %v3307_v10 = vpack.i.bf16 %v1392_v32, %v1408_v53 }
 0x3c3   :  { %3308 = vxpose.xlu1.b32.end [16/16] (narrow) %v3307_v10, 8 }
 0x3c7   :  { %2423 = vxpose.xlu1.b32.start.end [1/1] (short) %v2388_v21, 128 }
 0x3f8   :  { %1576 = vxpose.xlu0.b32.start.end [1/1] (short) %v142_v18, 128 }
 0x403   :  { %v3309_v47 = vpop.trf.xlu1 }
 0x404   :  { %v3313_v30 = vunpack.i.h.bf16 %v3309_v47  ;;  %v3310_v41 = vunpack.i.l.bf16 %v3309_v47 }
 0x406   :  { %1537 = vmatprep.mubr.f32.mxu0 %v3310_v41 }
 0x407   :  { %1538 = vmatmul.mubr.f32.vlgmr.msra.gmra.mxu0 %v3313_v30 }
 0x408   :  { %3038 = vmatpush1.msk.msra.mxu0 %vm311_vm1, %v1610_v52  ;;  %1776 = vmatprep.mubr.f32.mxu0 %v5108_v23 }
 0x435   :  { %2391 = vxpose.xlu0.b32.start.end [1/1] (short) %v2387_v3, 128 }
 0x437   :  { %v1560_v9 = vpop.trf.xlu0 }
 0x438   :  { %3039 = vmatmul.mubr.msk.f32.vlgmr.msra.gmra.mxu0 %vm214_vm2, %v1560_v9 }
 0x439   :  { %1782 = vmatprep.mubr.f32.mxu0 %v5108_v23 }
 0x43b   :  { %v1561_v60 = vpop.trf.xlu0 }
 0x43c   :  { %3040 = vmatmul.mubr.msk.f32.gmra.mxu0 %vm214_vm2, %v1561_v60 }
 0x43d   :  { %1788 = vmatprep.mubr.f32.mxu0 %v5108_v23 }
 0x43f   :  { %v1562_v33 = vpop.trf.xlu0 }
 0x440   :  { %3041 = vmatmul.mubr.msk.f32.gmra.mxu0 %vm214_vm2, %v1562_v33 }
 0x441   :  { %1794 = vmatprep.mubr.f32.mxu0 %v5108_v23 }
 0x443   :  { %v1563_v29 = vpop.trf.xlu0  ;;  %v2439_v15 = vpop.trf.xlu1 }
 0x444   :  { %3042 = vmatmul.mubr.msk.f32.gmra.mxu0 %vm214_vm2, %v1563_v29 }
 0x445   :  { %1800 = vmatprep.mubr.f32.mxu0 %v5108_v23 }
 0x447   :  { %v1564_v20 = vpop.trf.xlu0  ;;  %v2440_v58 = vpop.trf.xlu1 }
 0x448   :  { %3043 = vmatmul.mubr.msk.f32.gmra.mxu0 %vm214_vm2, %v1564_v20 }
 0x449   :  { %1806 = vmatprep.mubr.f32.mxu0 %v5108_v23 }
 0x44b   :  { %v1565_v38 = vpop.trf.xlu0  ;;  %v2441_v49 = vpop.trf.xlu1 }
 0x44c   :  { %3044 = vmatmul.mubr.msk.f32.gmra.mxu0 %vm214_vm2, %v1565_v38 }
 0x44d   :  { %1812 = vmatprep.mubr.f32.mxu0 %v5108_v23 }
 0x44f   :  { %v1566_v42 = vpop.trf.xlu0  ;;  %v2442_v48 = vpop.trf.xlu1 }
 0x450   :  { %3045 = vmatmul.mubr.msk.f32.gmra.mxu0 %vm214_vm2, %v1566_v42 }
 0x451   :  { %1818 = vmatprep.mubr.f32.mxu0 %v5108_v23 }
 0x453   :  { %v1567_v51 = vpop.trf.xlu0  ;;  %v2443_v57 = vpop.trf.xlu1 }
 0x454   :  { %3046 = vmatmul.mubr.msk.f32.gmra.mxu0 %vm214_vm2, %v1567_v51 }
 0x455   :  { %1824 = vmatprep.mubr.f32.mxu0 %v5108_v23 }
 0x457   :  { %v1568_v62 = vpop.trf.xlu0  ;;  %v2444_v22 = vpop.trf.xlu1 }
 0x458   :  { %3047 = vmatmul.mubr.msk.f32.gmra.mxu0 %vm214_vm2, %v1568_v62 }
 0x459   :  { %1830 = vmatprep.mubr.f32.mxu0 %v5108_v23 }
 0x45b   :  { %v1569_v13 = vpop.trf.xlu0  ;;  %v2445_v36 = vpop.trf.xlu1 }
 0x45c   :  { %3048 = vmatmul.mubr.msk.f32.gmra.mxu0 %vm214_vm2, %v1569_v13 }
 0x45d   :  { %1836 = vmatprep.mubr.f32.mxu0 %v5108_v23 }
 0x45f   :  { %v1570_v35 = vpop.trf.xlu0  ;;  %v2446_v32 = vpop.trf.xlu1 }
 0x460   :  { %3049 = vmatmul.mubr.msk.f32.gmra.mxu0 %vm214_vm2, %v1570_v35 }
 0x461   :  { %1842 = vmatprep.mubr.f32.mxu0 %v5108_v23 }
 0x463   :  { %v1571_v50 = vpop.trf.xlu0  ;;  %v2447_v24 = vpop.trf.xlu1 }
 0x464   :  { %3050 = vmatmul.mubr.msk.f32.gmra.mxu0 %vm214_vm2, %v1571_v50 }
 0x465   :  { %1848 = vmatprep.mubr.f32.mxu0 %v5108_v23 }
 0x467   :  { %v1572_v17 = vpop.trf.xlu0  ;;  %v2448_v21 = vpop.trf.xlu1 }
 0x468   :  { %3051 = vmatmul.mubr.msk.f32.gmra.mxu0 %vm214_vm2, %v1572_v17 }
 0x469   :  { %1854 = vmatprep.mubr.f32.mxu0 %v5108_v23 }
 0x46b   :  { %v1573_v11 = vpop.trf.xlu0  ;;  %v2449_v41 = vpop.trf.xlu1 }
 0x46c   :  { %3052 = vmatmul.mubr.msk.f32.gmra.mxu0 %vm214_vm2, %v1573_v11 }
 0x46d   :  { %1860 = vmatprep.mubr.f32.mxu0 %v5108_v23 }
 0x46f   :  { %v1574_v1 = vpop.trf.xlu0  ;;  %v2450_v9 = vpop.trf.xlu1 }
 0x470   :  { %3053 = vmatmul.mubr.msk.f32.gmra.mxu0 %vm214_vm2, %v1574_v1 }
 0x471   :  { %1866 = vmatprep.mubr.f32.mxu0 %v5108_v23 }
 0x473   :  { %v1575_v8 = vpop.trf.xlu0  ;;  %v2451_v38 = vpop.trf.xlu1 }
 0x474   :  { %3054 = vmatmul.mubr.msk.f32.gmra.mxu0 %vm214_vm2, %v1575_v8 }
 0x475   :  { %1872 = vmatprep.mubr.f32.mxu0 %v5108_v23 }
 0x477   :  { %v1592_v2 = vpop.trf.xlu0  ;;  %v2452_v50 = vpop.trf.xlu1 }
 0x478   :  { %3055 = vmatmul.mubr.msk.f32.gmra.mxu0 %vm214_vm2, %v1592_v2 }
 0x479   :  { %1878 = vmatprep.mubr.f32.mxu0 %v5108_v23 }
 0x47b   :  { %v1593_v0 = vpop.trf.xlu0  ;;  %v2453_v2 = vpop.trf.xlu1 }
 0x47c   :  { %3056 = vmatmul.mubr.msk.f32.gmra.mxu0 %vm214_vm2, %v1593_v0 }
 0x47d   :  { %1884 = vmatprep.mubr.f32.mxu0 %v5108_v23 }
 0x47f   :  { %v1594_v5 = vpop.trf.xlu0 }
 0x480   :  { %3057 = vmatmul.mubr.msk.f32.gmra.mxu0 %vm214_vm2, %v1594_v5 }
 0x481   :  { %1890 = vmatprep.mubr.f32.mxu0 %v5108_v23 }
 0x483   :  { %v1595_v43 = vpop.trf.xlu0 }
 0x484   :  { %3058 = vmatmul.mubr.msk.f32.gmra.mxu0 %vm214_vm2, %v1595_v43 }
 0x485   :  { %1896 = vmatprep.mubr.f32.mxu0 %v5108_v23 }
 0x487   :  { %v1596_v19 = vpop.trf.xlu0 }
 0x488   :  { %3059 = vmatmul.mubr.msk.f32.gmra.mxu0 %vm214_vm2, %v1596_v19 }
 0x489   :  { %1902 = vmatprep.mubr.f32.mxu0 %v5108_v23 }
 0x48b   :  { %v1597_v7 = vpop.trf.xlu0 }
 0x48c   :  { %3060 = vmatmul.mubr.msk.f32.gmra.mxu0 %vm214_vm2, %v1597_v7 }
 0x48d   :  { %1908 = vmatprep.mubr.f32.mxu0 %v5108_v23 }
 0x48f   :  { %v1598_v54 = vpop.trf.xlu0 }
 0x490   :  { %3061 = vmatmul.mubr.msk.f32.gmra.mxu0 %vm214_vm2, %v1598_v54  ;;  %v2454_v54 = vpop.trf.xlu1 }
 0x491   :  { %1914 = vmatprep.mubr.f32.mxu0 %v5108_v23 }
 0x493   :  { %v1599_v45 = vpop.trf.xlu0 }
 0x494   :  { %3062 = vmatmul.mubr.msk.f32.gmra.mxu0 %vm214_vm2, %v1599_v45 }
 0x495   :  { %1920 = vmatprep.mubr.f32.mxu0 %v5108_v23 }
 0x497   :  { %v1600_v12 = vpop.trf.xlu0 }
 0x498   :  { %3063 = vmatmul.mubr.msk.f32.gmra.mxu0 %vm214_vm2, %v1600_v12 }
 0x499   :  { %1926 = vmatprep.mubr.f32.mxu0 %v5108_v23 }
 0x49b   :  { %v1601_v31 = vpop.trf.xlu0 }
 0x49c   :  { %3064 = vmatmul.mubr.msk.f32.gmra.mxu0 %vm214_vm2, %v1601_v31 }
 0x49d   :  { %1932 = vmatprep.mubr.f32.mxu0 %v5108_v23 }
 0x49f   :  { %v1602_v26 = vpop.trf.xlu0 }
 0x4a0   :  { %3065 = vmatmul.mubr.msk.f32.gmra.mxu0 %vm214_vm2, %v1602_v26 }
 0x4a1   :  { %1938 = vmatprep.mubr.f32.mxu0 %v5108_v23 }
 0x4a3   :  { %v1603_v27 = vpop.trf.xlu0 }
 0x4a4   :  { %3066 = vmatmul.mubr.msk.f32.gmra.mxu0 %vm214_vm2, %v1603_v27 }
 0x4a5   :  { %1944 = vmatprep.mubr.f32.mxu0 %v5108_v23 }
 0x4a7   :  { %v1604_v25 = vpop.trf.xlu0 }
 0x4a8   :  { %3067 = vmatmul.mubr.msk.f32.gmra.mxu0 %vm214_vm2, %v1604_v25 }
 0x4a9   :  { %1950 = vmatprep.mubr.f32.mxu0 %v5108_v23 }
 0x4ab   :  { %v1605_v37 = vpop.trf.xlu0 }
 0x4ac   :  { %3068 = vmatmul.mubr.msk.f32.gmra.mxu0 %vm214_vm2, %v1605_v37 }
 0x4ad   :  { %1956 = vmatprep.mubr.f32.mxu0 %v5108_v23 }
 0x4af   :  { %v1606_v63 = vpop.trf.xlu0 }
 0x4b0   :  { %3069 = vmatmul.mubr.msk.f32.gmra.mxu0 %vm214_vm2, %v1606_v63 }
 0x4b1   :  { %1962 = vmatprep.mubr.f32.mxu0 %v5108_v23 }
 0x4b3   :  { %v1607_v44 = vpop.trf.xlu0 }
 0x4b4   :  { %3070 = vmatmul.mubr.msk.f32.gmra.mxu0 %vm214_vm2, %v1607_v44 }
 0x4b7   :  { %v2407_v46 = vpop.trf.xlu0 }
 0x4b8   :  { %3222 = vmatprep.mubr.msk.f32.mxu1 %vm214_vm2, %v2407_v46 }
 0x4bb   :  { %v2408_v61 = vpop.trf.xlu0 }
 0x4bc   :  { %3223 = vmatmul.mubr.msk.f32.vlgmr.msra.gmra.mxu1 %vm214_vm2, %v2408_v61 }
 0x4bf   :  { %v2409_v4 = vpop.trf.xlu0 }
 0x4c0   :  { %3225 = vmatprep.mubr.msk.f32.mxu1 %vm214_vm2, %v2409_v4 }
 0x4c3   :  { %v2410_v16 = vpop.trf.xlu0 }
 0x4c4   :  { %3226 = vmatmul.mubr.msk.f32.gmra.mxu1 %vm214_vm2, %v2410_v16 }
 0x4c7   :  { %v2411_v34 = vpop.trf.xlu0  ;;  %v4505_v47 = vpop.f32.mrf.mxu0 }
 0x4c8   :  { %3228 = vmatprep.mubr.msk.f32.mxu1 %vm214_vm2, %v2411_v34  ;;  %5109 = vst [vmem:[#allocation9_spill] sm:$0xff] %v4505_v47 }
 0x4c9   :  { %v4509_v59 = vpop.f32.mrf.mxu0 }
 0x4ca   :  { %5110 = vst [vmem:[#allocation10_spill] sm:$0xff] %v4509_v59 }
 0x4cb   :  { %v2412_v40 = vpop.trf.xlu0 }
 0x4cc   :  { %3229 = vmatmul.mubr.msk.f32.gmra.mxu1 %vm214_vm2, %v2412_v40 }
 0x4cf   :  { %v2413_v56 = vpop.trf.xlu0 }
 0x4d0   :  { %3231 = vmatprep.mubr.msk.f32.mxu1 %vm214_vm2, %v2413_v56 }
 0x4d3   :  { %v2414_v14 = vpop.trf.xlu0 }
 0x4d4   :  { %3232 = vmatmul.mubr.msk.f32.gmra.mxu1 %vm214_vm2, %v2414_v14 }
 0x4d7   :  { %v2415_v6 = vpop.trf.xlu0 }
 0x4d8   :  { %3234 = vmatprep.mubr.msk.f32.mxu1 %vm214_vm2, %v2415_v6 }
 0x4db   :  { %v2416_v28 = vpop.trf.xlu0 }
 0x4dc   :  { %3235 = vmatmul.mubr.msk.f32.gmra.mxu1 %vm214_vm2, %v2416_v28 }
 0x4df   :  { %v2417_v55 = vpop.trf.xlu0 }
 0x4e0   :  { %3237 = vmatprep.mubr.msk.f32.mxu1 %vm214_vm2, %v2417_v55 }
 0x4e3   :  { %v2418_v39 = vpop.trf.xlu0 }
 0x4e4   :  { %3238 = vmatmul.mubr.msk.f32.gmra.mxu1 %vm214_vm2, %v2418_v39 }
 0x4e7   :  { %v2419_v53 = vpop.trf.xlu0 }
 0x4e8   :  { %3240 = vmatprep.mubr.msk.f32.mxu1 %vm214_vm2, %v2419_v53 }
 0x4eb   :  { %v2420_v18 = vpop.trf.xlu0 }
 0x4ec   :  { %3241 = vmatmul.mubr.msk.f32.gmra.mxu1 %vm214_vm2, %v2420_v18 }
 0x4ef   :  { %v2421_v10 = vpop.trf.xlu0 }
 0x4f0   :  { %3243 = vmatprep.mubr.msk.f32.mxu1 %vm214_vm2, %v2421_v10 }
 0x4f3   :  { %v2422_v30 = vpop.trf.xlu0 }
 0x4f4   :  { %3244 = vmatmul.mubr.msk.f32.gmra.mxu1 %vm214_vm2, %v2422_v30 }
 0x4f5   :  { %3246 = vmatprep.mubr.msk.f32.mxu1 %vm214_vm2, %v2439_v15 }
 0x4f8   :  { %v4511_v52 = vpop.f32.mrf.mxu0  ;;  %3247 = vmatmul.mubr.msk.f32.gmra.mxu1 %vm214_vm2, %v2440_v58 }
 0x4f9   :  { %3249 = vmatprep.mubr.msk.f32.mxu1 %vm214_vm2, %v2441_v49 }
 0x4fa   :  { %v4515_v23 = vpop.f32.mrf.mxu0 }
 0x4fb   :  { %v1969_v3 = vmax.f32 %v4511_v52, %v4515_v23 }
 0x4fc   :  { %v4519_v60 = vpop.f32.mrf.mxu0  ;;  %3250 = vmatmul.mubr.msk.f32.gmra.mxu1 %vm214_vm2, %v2442_v48 }
 0x4fd   :  { %1970 = vmax.xlane.f32.xlu0 %v1969_v3  ;;  %3252 = vmatprep.mubr.msk.f32.mxu1 %vm214_vm2, %v2443_v57 }
 0x4fe   :  { %v4523_v33 = vpop.f32.mrf.mxu0 }
 0x4ff   :  { %v1972_v29 = vmax.f32 %v4519_v60, %v4523_v33 }
 0x500   :  { %v4527_v20 = vpop.f32.mrf.mxu0  ;;  %3253 = vmatmul.mubr.msk.f32.gmra.mxu1 %vm214_vm2, %v2444_v22 }
 0x501   :  { %1973 = vmax.xlane.f32.xlu1 %v1972_v29  ;;  %3255 = vmatprep.mubr.msk.f32.mxu1 %vm214_vm2, %v2445_v36 }
 0x502   :  { %v4531_v42 = vpop.f32.mrf.mxu0 }
 0x503   :  { %v1975_v51 = vmax.f32 %v4527_v20, %v4531_v42 }
 0x504   :  { %v4535_v62 = vpop.f32.mrf.mxu0  ;;  %3256 = vmatmul.mubr.msk.f32.gmra.mxu1 %vm214_vm2, %v2446_v32 }
 0x505   :  { %1976 = vmax.xlane.f32.xlu1 %v1975_v51  ;;  %3258 = vmatprep.mubr.msk.f32.mxu1 %vm214_vm2, %v2447_v24 }
 0x506   :  { %v4539_v13 = vpop.f32.mrf.mxu0 }
 0x507   :  { %v1978_v35 = vmax.f32 %v4535_v62, %v4539_v13 }
 0x508   :  { %v4543_v17 = vpop.f32.mrf.mxu0  ;;  %3259 = vmatmul.mubr.msk.f32.gmra.mxu1 %vm214_vm2, %v2448_v21 }
 0x509   :  { %1979 = vmax.xlane.f32.xlu1 %v1978_v35  ;;  %3261 = vmatprep.mubr.msk.f32.mxu1 %vm214_vm2, %v2449_v41 }
 0x50a   :  { %v4547_v11 = vpop.f32.mrf.mxu0 }
 0x50b   :  { %v1981_v1 = vmax.f32 %v4543_v17, %v4547_v11 }
 0x50c   :  { %v4551_v8 = vpop.f32.mrf.mxu0  ;;  %3262 = vmatmul.mubr.msk.f32.gmra.mxu1 %vm214_vm2, %v2450_v9 }
 0x50d   :  { %1982 = vmax.xlane.f32.xlu1 %v1981_v1  ;;  %3264 = vmatprep.mubr.msk.f32.mxu1 %vm214_vm2, %v2451_v38 }
 0x50e   :  { %v4555_v0 = vpop.f32.mrf.mxu0 }
 0x50f   :  { %v1984_v5 = vmax.f32 %v4551_v8, %v4555_v0 }
 0x510   :  { %v4559_v43 = vpop.f32.mrf.mxu0  ;;  %3265 = vmatmul.mubr.msk.f32.gmra.mxu1 %vm214_vm2, %v2452_v50 }
 0x511   :  { %1985 = vmax.xlane.f32.xlu1 %v1984_v5  ;;  %3267 = vmatprep.mubr.msk.f32.mxu1 %vm214_vm2, %v2453_v2 }
 0x512   :  { %v4563_v19 = vpop.f32.mrf.mxu0 }
 0x513   :  { %v1987_v7 = vmax.f32 %v4559_v43, %v4563_v19 }
 0x514   :  { %v4567_v45 = vpop.f32.mrf.mxu0  ;;  %3268 = vmatmul.mubr.msk.f32.gmra.mxu1 %vm214_vm2, %v2454_v54 }
 0x515   :  { %1988 = vmax.xlane.f32.xlu1 %v1987_v7 }
 0x516   :  { %v4570_v12 = vpop.f32.mrf.mxu0 }
 0x517   :  { %v1990_v31 = vmax.f32 %v4567_v45, %v4570_v12 }
 0x518   :  { %v4574_v26 = vpop.f32.mrf.mxu0 }
 0x519   :  { %1991 = vmax.xlane.f32.xlu1 %v1990_v31 }
 0x51a   :  { %v4576_v27 = vpop.f32.mrf.mxu0 }
 0x51b   :  { %v1993_v25 = vmax.f32 %v4574_v26, %v4576_v27 }
 0x51c   :  { %v4580_v37 = vpop.f32.mrf.mxu0 }
 0x51d   :  { %1994 = vmax.xlane.f32.xlu1 %v1993_v25 }
 0x51e   :  { %v4582_v63 = vpop.f32.mrf.mxu0 }
 0x51f   :  { %v1996_v44 = vmax.f32 %v4580_v37, %v4582_v63 }
 0x520   :  { %v4586_v46 = vpop.f32.mrf.mxu0 }
 0x521   :  { %1997 = vmax.xlane.f32.xlu1 %v1996_v44 }
 0x522   :  { %v4588_v61 = vpop.f32.mrf.mxu0 }
 0x523   :  { %v1999_v4 = vmax.f32 %v4586_v46, %v4588_v61 }
 0x524   :  { %v4592_v16 = vpop.f32.mrf.mxu0 }
 0x525   :  { %2000 = vmax.xlane.f32.xlu1 %v1999_v4 }
 0x526   :  { %v4594_v34 = vpop.f32.mrf.mxu0 }
 0x527   :  { %v2002_v15 = vmax.f32 %v4592_v16, %v4594_v34 }
 0x528   :  { %v4598_v40 = vpop.f32.mrf.mxu0 }
 0x529   :  { %2003 = vmax.xlane.f32.xlu1 %v2002_v15 }
 0x52a   :  { %v4600_v58 = vpop.f32.mrf.mxu0 }
 0x52b   :  { %v2005_v15 = vmax.f32 %v4598_v40, %v4600_v58 }
 0x52c   :  { %v4602_v56 = vpop.f32.mrf.mxu0 }
 0x52e   :  { %v4604_v49 = vpop.f32.mrf.mxu0 }
 0x530   :  { %v4606_v14 = vpop.f32.mrf.mxu0 }
 0x531   :  { %5111 = vst [vmem:[#allocation11_spill] sm:$0xff] %v4606_v14 }
 0x532   :  { %v4608_v48 = vpop.f32.mrf.mxu0 }
 0x533   :  { %5112 = vst [vmem:[#allocation12_spill] sm:$0xff] %v4608_v48 }
 0x534   :  { %v4610_v6 = vpop.f32.mrf.mxu0 }
 0x535   :  { %5113 = vst [vmem:[#allocation13_spill] sm:$0xff] %v4610_v6 }
 0x536   :  { %v4612_v57 = vpop.f32.mrf.mxu0 }
 0x537   :  { %5114 = vst [vmem:[#allocation14_spill] sm:$0xff] %v4612_v57  ;;  %v2014_v59 = vmax.f32 %v4610_v6, %v4612_v57 }
 0x538   :  { %v4614_v28 = vpop.f32.mrf.mxu0 }
 0x53a   :  { %v4616_v22 = vpop.f32.mrf.mxu0 }
 0x53b   :  { %v2017_v55 = vmax.f32 %v4614_v28, %v4616_v22 }
 0x53c   :  { %v4620_v36 = vpop.f32.mrf.mxu0 }
 0x53d   :  { %2018 = vmax.xlane.f32.xlu1 %v2017_v55 }
 0x53e   :  { %v4622_v39 = vpop.f32.mrf.mxu0 }
 0x53f   :  { %v2020_v32 = vmax.f32 %v4620_v36, %v4622_v39 }
 0x540   :  { %v4626_v53 = vpop.f32.mrf.mxu0 }
 0x541   :  { %2021 = vmax.xlane.f32.xlu1 %v2020_v32 }
 0x542   :  { %v4628_v24 = vpop.f32.mrf.mxu0 }
 0x543   :  { %v2023_v18 = vmax.f32 %v4626_v53, %v4628_v24 }
 0x544   :  { %v4632_v10 = vpop.f32.mrf.mxu0 }
 0x545   :  { %2024 = vmax.xlane.f32.xlu1 %v2023_v18 }
 0x546   :  { %v4634_v21 = vpop.f32.mrf.mxu0 }
 0x547   :  { %v2026_v30 = vmax.f32 %v4632_v10, %v4634_v21 }
 0x548   :  { %v4638_v41 = vpop.f32.mrf.mxu0 }
 0x549   :  { %2027 = vmax.xlane.f32.xlu1 %v2026_v30  ;;  %v2008_v30 = vmax.f32 %v4602_v56, %v4604_v49 }
 0x54a   :  { %v4640_v3 = vpop.f32.mrf.mxu0 }
 0x54b   :  { %v2029_v9 = vmax.f32 %v4638_v41, %v4640_v3 }
 0x54c   :  { %v4644_v29 = vpop.f32.mrf.mxu0 }
 0x54d   :  { %2030 = vmax.xlane.f32.xlu1 %v2029_v9 }
 0x54e   :  { %v4646_v38 = vpop.f32.mrf.mxu0 }
 0x54f   :  { %v2032_v51 = vmax.f32 %v4644_v29, %v4646_v38 }
 0x550   :  { %v4650_v35 = vpop.f32.mrf.mxu0 }
 0x551   :  { %2033 = vmax.xlane.f32.xlu1 %v2032_v51 }
 0x552   :  { %v4652_v50 = vpop.f32.mrf.mxu0 }
 0x553   :  { %v2035_v1 = vmax.f32 %v4650_v35, %v4652_v50 }
 0x554   :  { %v4656_v2 = vpop.f32.mrf.mxu0 }
 0x555   :  { %2036 = vmax.xlane.f32.xlu1 %v2035_v1 }
 0x556   :  { %v4658_v5 = vpop.f32.mrf.mxu0 }
 0x557   :  { %v2038_v7 = vmax.f32 %v4656_v2, %v4658_v5 }
 0x558   :  { %v4662_v54 = vpop.f32.mrf.mxu0 }
 0x559   :  { %2039 = vmax.xlane.f32.xlu1 %v2038_v7  ;;  %v2011_v7 = vmax.f32 %v4606_v14, %v4608_v48 }
 0x55a   :  { %v4664_v31 = vpop.f32.mrf.mxu0 }
 0x55b   :  { %v2041_v25 = vmax.f32 %v4662_v54, %v4664_v31 }
 0x55c   :  { %v4668_v44 = vpop.f32.mrf.mxu0 }
 0x55d   :  { %2042 = vmax.xlane.f32.xlu1 %v2041_v25 }
 0x55e   :  { %v4670_v4 = vpop.f32.mrf.mxu0 }
 0x55f   :  { %v2044_v55 = vmax.f32 %v4668_v44, %v4670_v4 }
 0x560   :  { %v4676_v32 = vpop.f32.mrf.mxu0 }
 0x561   :  { %2006 = vmax.xlane.f32.xlu1 %v2005_v15  ;;  %2045 = vmax.xlane.f32.xlu0 %v2044_v55 }
 0x562   :  { %v4678_v18 = vpop.f32.mrf.mxu0 }
 0x563   :  { %v2047_v9 = vmax.f32 %v4676_v32, %v4678_v18 }
 0x564   :  { %v4684_v51 = vpop.f32.mrf.mxu0 }
 0x565   :  { %5115 = vst [vmem:[#allocation15_spill] sm:$0xff] %v4684_v51  ;;  %2009 = vmax.xlane.f32.xlu1 %v2008_v30  ;;  %2048 = vmax.xlane.f32.xlu0 %v2047_v9 }
 0x566   :  { %v4686_v1 = vpop.f32.mrf.mxu0 }
 0x567   :  { %5116 = vst [vmem:[#allocation16_spill] sm:$0xff] %v4686_v1  ;;  %v2050_v25 = vmax.f32 %v4684_v51, %v4686_v1 }
 0x568   :  { %v4692_v15 = vpop.f32.mrf.mxu0 }
 0x569   :  { %5117 = vst [vmem:[#allocation17_spill] sm:$0xff] %v4692_v15  ;;  %2012 = vmax.xlane.f32.xlu1 %v2011_v7  ;;  %2051 = vmax.xlane.f32.xlu0 %v2050_v25 }
 0x56a   :  { %v4694_v55 = vpop.f32.mrf.mxu0 }
 0x56b   :  { %5118 = vst [vmem:[#allocation18_spill] sm:$0xff] %v4694_v55  ;;  %v2053_v30 = vmax.f32 %v4692_v15, %v4694_v55 }
 0x56c   :  { %v4700_v9 = vpop.f32.mrf.mxu0 }
 0x56d   :  { %5119 = vst [vmem:[#allocation19_spill] sm:$0xff] %v4700_v9  ;;  %2015 = vmax.xlane.f32.xlu1 %v2014_v59  ;;  %2054 = vmax.xlane.f32.xlu0 %v2053_v30 }
 0x56e   :  { %v4702_v47 = vpop.f32.mrf.mxu0 }
 0x56f   :  { %5120 = vst [vmem:[#allocation20_spill] sm:$0xff] %v4702_v47  ;;  %v2056_v1 = vmax.f32 %v4700_v9, %v4702_v47 }
 0x570   :  { %v4706_v51 = vpop.f32.mrf.mxu0 }
 0x571   :  { %5121 = vst [vmem:[#allocation21_spill] sm:$0xff] %v4706_v51  ;;  %2057 = vmax.xlane.f32.xlu0 %v2056_v1 }
 0x572   :  { %v4708_v7 = vpop.f32.mrf.mxu0 }
 0x573   :  { %5122 = vst [vmem:[#allocation6_spill] sm:$0xff] %v4708_v7  ;;  %v2059_v25 = vmax.f32 %v4706_v51, %v4708_v7 }
 0x574   :  { %v4712_v57 = vpop.f32.mrf.mxu0 }
 0x575   :  { %2060 = vmax.xlane.f32.xlu0 %v2059_v25 }
 0x576   :  { %v4714_v55 = vpop.f32.mrf.mxu0 }
 0x577   :  { %5123 = vst [vmem:[#allocation7_spill] sm:$0xff] %v4714_v55  ;;  %v2062_v59 = vmax.f32 %v4712_v57, %v4714_v55 }
 0x579   :  { %2063 = vmax.xlane.f32.xlu0 %v2062_v59 }
 0x586   :  { %v1971_v30 = vpop.xlane.xlu0 %1970 }
 0x587   :  { %v2065_v47 = vsub.f32 %v4511_v52, %v1971_v30  ;;  %v2066_v9 = vsub.f32 %v4515_v23, %v1971_v30 }
 0x589   :  { %v2129_v1 = vmul.f32 1.442695, %v2065_v47  ;;  %v2131_v15 = vmul.f32 1.442695, %v2066_v9 }
 0x58a   :  { %v1974_v6 = vpop.xlane.xlu1 %1973 }
 0x58b   :  { %3543 = vpow2.f32 %v2129_v1  ;;  %v2067_v7 = vsub.f32 %v4519_v60, %v1974_v6  ;;  %v2068_v51 = vsub.f32 %v4523_v33, %v1974_v6 }
 0x58c   :  { %3545 = vpow2.f32 %v2131_v15 }
 0x58d   :  { %v2133_v25 = vmul.f32 1.442695, %v2067_v7  ;;  %v2135_v48 = vmul.f32 1.442695, %v2068_v51 }
 0x58e   :  { %v1977_v14 = vpop.xlane.xlu1 %1976 }
 0x58f   :  { %3547 = vpow2.f32 %v2133_v25  ;;  %v2069_v59 = vsub.f32 %v4527_v20, %v1977_v14  ;;  %v2070_v55 = vsub.f32 %v4531_v42, %v1977_v14 }
 0x590   :  { %3549 = vpow2.f32 %v2135_v48 }
 0x591   :  { %v2137_v52 = vmul.f32 1.442695, %v2069_v59  ;;  %v2139_v23 = vmul.f32 1.442695, %v2070_v55 }
 0x592   :  { %v1980_v47 = vpop.xlane.xlu1 %1979 }
 0x593   :  { %3551 = vpow2.f32 %v2137_v52  ;;  %v2071_v9 = vsub.f32 %v4535_v62, %v1980_v47  ;;  %v2072_v60 = vsub.f32 %v4539_v13, %v1980_v47 }
 0x594   :  { %3553 = vpow2.f32 %v2139_v23 }
 0x595   :  { %v2141_v33 = vmul.f32 1.442695, %v2071_v9  ;;  %v2143_v6 = vmul.f32 1.442695, %v2072_v60 }
 0x596   :  { %v1983_v15 = vpop.xlane.xlu1 %1982 }
 0x597   :  { %3555 = vpow2.f32 %v2141_v33  ;;  %v2073_v51 = vsub.f32 %v4543_v17, %v1983_v15  ;;  %v2074_v20 = vsub.f32 %v4547_v11, %v1983_v15 }
 0x598   :  { %v4728_v7 = vpop.eup %3543  ;;  %3557 = vpow2.f32 %v2143_v6 }
 0x599   :  { %v4730_v42 = vpop.eup %3545  ;;  %v2145_v14 = vmul.f32 1.442695, %v2073_v51  ;;  %v2147_v48 = vmul.f32 1.442695, %v2074_v20 }
 0x59a   :  { %v1986_v55 = vpop.xlane.xlu1 %1985  ;;  %v2257_v62 = vadd.f32 %v4730_v42, %v4728_v7 }
 0x59b   :  { %3559 = vpow2.f32 %v2145_v14  ;;  %v2075_v13 = vsub.f32 %v4551_v8, %v1986_v55  ;;  %v2076_v30 = vsub.f32 %v4555_v0, %v1986_v55 }
 0x59c   :  { %v4736_v1 = vpop.eup %3547  ;;  %3561 = vpow2.f32 %v2147_v48  ;;  %2258 = vadd.xlane.f32.xlu1 %v2257_v62 }
 0x59d   :  { %v4738_v17 = vpop.eup %3549  ;;  %v2149_v11 = vmul.f32 1.442695, %v2075_v13  ;;  %v2151_v25 = vmul.f32 1.442695, %v2076_v30 }
 0x59e   :  { %v1989_v59 = vpop.xlane.xlu1 %1988  ;;  %v2260_v52 = vadd.f32 %v4738_v17, %v4736_v1 }
 0x59f   :  { %3563 = vpow2.f32 %v2149_v11  ;;  %v2077_v23 = vsub.f32 %v4559_v43, %v1989_v59  ;;  %v2078_v47 = vsub.f32 %v4563_v19, %v1989_v59 }
 0x5a0   :  { %v4744_v8 = vpop.eup %3551  ;;  %3565 = vpow2.f32 %v2151_v25  ;;  %2261 = vadd.xlane.f32.xlu1 %v2260_v52 }
 0x5a1   :  { %v4746_v0 = vpop.eup %3553  ;;  %v2153_v9 = vmul.f32 1.442695, %v2077_v23  ;;  %v2155_v60 = vmul.f32 1.442695, %v2078_v47 }
 0x5a2   :  { %v1992_v33 = vpop.xlane.xlu1 %1991  ;;  %v2263_v6 = vadd.f32 %v4746_v0, %v4744_v8 }
 0x5a3   :  { %3567 = vpow2.f32 %v2153_v9  ;;  %v2079_v15 = vsub.f32 %v4567_v45, %v1992_v33  ;;  %v2080_v51 = vsub.f32 %v4570_v12, %v1992_v33 }
 0x5a4   :  { %v4752_v43 = vpop.eup %3555  ;;  %3569 = vpow2.f32 %v2155_v60  ;;  %2264 = vadd.xlane.f32.xlu1 %v2263_v6 }
 0x5a5   :  { %v4754_v19 = vpop.eup %3557  ;;  %v2157_v20 = vmul.f32 1.442695, %v2079_v15  ;;  %v2159_v14 = vmul.f32 1.442695, %v2080_v51 }
 0x5a6   :  { %v1995_v48 = vpop.xlane.xlu1 %1994  ;;  %v2266_v55 = vadd.f32 %v4754_v19, %v4752_v43 }
 0x5a7   :  { %3571 = vpow2.f32 %v2157_v20  ;;  %v2081_v62 = vsub.f32 %v4574_v26, %v1995_v48  ;;  %v2082_v13 = vsub.f32 %v4576_v27, %v1995_v48 }
 0x5a8   :  { %v4760_v45 = vpop.eup %3559  ;;  %3573 = vpow2.f32 %v2159_v14  ;;  %2267 = vadd.xlane.f32.xlu1 %v2266_v55 }
 0x5a9   :  { %v4762_v12 = vpop.eup %3561  ;;  %v2161_v30 = vmul.f32 1.442695, %v2081_v62  ;;  %v2163_v11 = vmul.f32 1.442695, %v2082_v13 }
 0x5aa   :  { %v1998_v25 = vpop.xlane.xlu1 %1997  ;;  %v2269_v59 = vadd.f32 %v4762_v12, %v4760_v45 }
 0x5ab   :  { %3575 = vpow2.f32 %v2161_v30  ;;  %v2083_v52 = vsub.f32 %v4580_v37, %v1998_v25  ;;  %v2084_v23 = vsub.f32 %v4582_v63, %v1998_v25 }
 0x5ac   :  { %v4768_v26 = vpop.eup %3563  ;;  %3577 = vpow2.f32 %v2163_v11  ;;  %2270 = vadd.xlane.f32.xlu1 %v2269_v59 }
 0x5ad   :  { %v4770_v27 = vpop.eup %3565  ;;  %v2165_v47 = vmul.f32 1.442695, %v2083_v52  ;;  %v2167_v9 = vmul.f32 1.442695, %v2084_v23 }
 0x5ae   :  { %v2001_v60 = vpop.xlane.xlu1 %2000  ;;  %v2272_v33 = vadd.f32 %v4770_v27, %v4768_v26 }
 0x5af   :  { %3579 = vpow2.f32 %v2165_v47  ;;  %v2085_v6 = vsub.f32 %v4586_v46, %v2001_v60  ;;  %v2086_v15 = vsub.f32 %v4588_v61, %v2001_v60 }
 0x5b0   :  { %v4776_v37 = vpop.eup %3567  ;;  %3581 = vpow2.f32 %v2167_v9  ;;  %2273 = vadd.xlane.f32.xlu1 %v2272_v33 }
 0x5b1   :  { %v4778_v63 = vpop.eup %3569  ;;  %v2169_v51 = vmul.f32 1.442695, %v2085_v6  ;;  %v2171_v20 = vmul.f32 1.442695, %v2086_v15 }
 0x5b2   :  { %v2004_v14 = vpop.xlane.xlu1 %2003  ;;  %v2275_v48 = vadd.f32 %v4778_v63, %v4776_v37 }
 0x5b3   :  { %3583 = vpow2.f32 %v2169_v51  ;;  %v2087_v55 = vsub.f32 %v4592_v16, %v2004_v14  ;;  %v2088_v62 = vsub.f32 %v4594_v34, %v2004_v14 }
 0x5b4   :  { %v4784_v46 = vpop.eup %3571  ;;  %3585 = vpow2.f32 %v2171_v20  ;;  %2276 = vadd.xlane.f32.xlu1 %v2275_v48 }
 0x5b5   :  { %v4786_v61 = vpop.eup %3573  ;;  %v2173_v13 = vmul.f32 1.442695, %v2087_v55  ;;  %v2175_v30 = vmul.f32 1.442695, %v2088_v62 }
 0x5b6   :  { %v2278_v11 = vadd.f32 %v4786_v61, %v4784_v46 }
 0x5b7   :  { %3587 = vpow2.f32 %v2173_v13 }
 0x5b8   :  { %v4790_v25 = vpop.eup %3575  ;;  %3589 = vpow2.f32 %v2175_v30  ;;  %2279 = vadd.xlane.f32.xlu1 %v2278_v11 }
 0x5b9   :  { %v4792_v59 = vpop.eup %3577 }
 0x5ba   :  { %v2281_v16 = vadd.f32 %v4792_v59, %v4790_v25 }
 0x5bc   :  { %v4796_v34 = vpop.eup %3579  ;;  %2282 = vadd.xlane.f32.xlu1 %v2281_v16 }
 0x5bd   :  { %v4798_v52 = vpop.eup %3581 }
 0x5be   :  { %v2284_v23 = vadd.f32 %v4798_v52, %v4796_v34 }
 0x5c0   :  { %v4802_v47 = vpop.eup %3583  ;;  %2285 = vadd.xlane.f32.xlu1 %v2284_v23 }
 0x5c1   :  { %v4804_v9 = vpop.eup %3585 }
 0x5c2   :  { %v2287_v60 = vadd.f32 %v4804_v9, %v4802_v47 }
 0x5c4   :  { %v4808_v33 = vpop.eup %3587  ;;  %2288 = vadd.xlane.f32.xlu1 %v2287_v60 }
 0x5c5   :  { %v4810_v6 = vpop.eup %3589 }
 0x5c6   :  { %v2019_v15 = vpop.xlane.xlu1 %2018  ;;  %v2290_v51 = vadd.f32 %v4810_v6, %v4808_v33 }
 0x5c7   :  { %v2097_v20 = vsub.f32 %v4614_v28, %v2019_v15  ;;  %v2098_v14 = vsub.f32 %v4616_v22, %v2019_v15 }
 0x5c8   :  { %2291 = vadd.xlane.f32.xlu1 %v2290_v51 }
 0x5c9   :  { %v2193_v48 = vmul.f32 1.442695, %v2097_v20  ;;  %v2195_v55 = vmul.f32 1.442695, %v2098_v14 }
 0x5ca   :  { %v2022_v62 = vpop.xlane.xlu1 %2021 }
 0x5cb   :  { %3591 = vpow2.f32 %v2193_v48  ;;  %v2099_v13 = vsub.f32 %v4620_v36, %v2022_v62  ;;  %v2100_v30 = vsub.f32 %v4622_v39, %v2022_v62 }
 0x5cc   :  { %3593 = vpow2.f32 %v2195_v55 }
 0x5cd   :  { %v2197_v11 = vmul.f32 1.442695, %v2099_v13  ;;  %v2199_v16 = vmul.f32 1.442695, %v2100_v30 }
 0x5ce   :  { %v2025_v23 = vpop.xlane.xlu1 %2024 }
 0x5cf   :  { %3595 = vpow2.f32 %v2197_v11  ;;  %v2101_v60 = vsub.f32 %v4626_v53, %v2025_v23  ;;  %v2102_v28 = vsub.f32 %v4628_v24, %v2025_v23 }
 0x5d0   :  { %3597 = vpow2.f32 %v2199_v16 }
 0x5d1   :  { %v2201_v22 = vmul.f32 1.442695, %v2101_v60  ;;  %v2203_v15 = vmul.f32 1.442695, %v2102_v28 }
 0x5d2   :  { %v2028_v51 = vpop.xlane.xlu1 %2027 }
 0x5d3   :  { %3599 = vpow2.f32 %v2201_v22  ;;  %v2103_v20 = vsub.f32 %v4632_v10, %v2028_v51  ;;  %v2104_v36 = vsub.f32 %v4634_v21, %v2028_v51 }
 0x5d4   :  { %3601 = vpow2.f32 %v2203_v15 }
 0x5d5   :  { %v2205_v39 = vmul.f32 1.442695, %v2103_v20  ;;  %v2207_v14 = vmul.f32 1.442695, %v2104_v36 }
 0x5d6   :  { %v2031_v48 = vpop.xlane.xlu1 %2030 }
 0x5d7   :  { %3603 = vpow2.f32 %v2205_v39  ;;  %v2105_v55 = vsub.f32 %v4638_v41, %v2031_v48  ;;  %v2106_v53 = vsub.f32 %v4640_v3, %v2031_v48 }
 0x5d8   :  { %v4824_v62 = vpop.eup %3591  ;;  %3605 = vpow2.f32 %v2207_v14 }
 0x5d9   :  { %5124 = vst [vmem:[#allocation8_spill] sm:$0xff] %v4824_v62  ;;  %v4826_v24 = vpop.eup %3593  ;;  %v2209_v13 = vmul.f32 1.442695, %v2105_v55  ;;  %v2211_v30 = vmul.f32 1.442695, %v2106_v53 }
 0x5da   :  { %5125 = vst [vmem:[#allocation5_spill] sm:$0xff] %v4826_v24  ;;  %v2034_v11 = vpop.xlane.xlu1 %2033  ;;  %v2305_v10 = vadd.f32 %v4826_v24, %v4824_v62 }
 0x5db   :  { %3607 = vpow2.f32 %v2209_v13  ;;  %v2107_v21 = vsub.f32 %v4644_v29, %v2034_v11  ;;  %v2108_v16 = vsub.f32 %v4646_v38, %v2034_v11 }
 0x5dc   :  { %v4832_v23 = vpop.eup %3595  ;;  %3609 = vpow2.f32 %v2211_v30  ;;  %2306 = vadd.xlane.f32.xlu0 %v2305_v10 }
 0x5dd   :  { %v4834_v41 = vpop.eup %3597  ;;  %v2213_v3 = vmul.f32 1.442695, %v2107_v21  ;;  %v2215_v60 = vmul.f32 1.442695, %v2108_v16 }
 0x5de   :  { %v2037_v28 = vpop.xlane.xlu1 %2036  ;;  %v2308_v22 = vadd.f32 %v4834_v41, %v4832_v23 }
 0x5df   :  { %3611 = vpow2.f32 %v2213_v3  ;;  %v2109_v15 = vsub.f32 %v4650_v35, %v2037_v28  ;;  %v2110_v51 = vsub.f32 %v4652_v50, %v2037_v28 }
 0x5e0   :  { %v4840_v29 = vpop.eup %3599  ;;  %3613 = vpow2.f32 %v2215_v60  ;;  %2309 = vadd.xlane.f32.xlu0 %v2308_v22 }
 0x5e1   :  { %v4842_v38 = vpop.eup %3601  ;;  %v2217_v20 = vmul.f32 1.442695, %v2109_v15  ;;  %v2219_v36 = vmul.f32 1.442695, %v2110_v51 }
 0x5e2   :  { %v2040_v39 = vpop.xlane.xlu1 %2039  ;;  %v2311_v14 = vadd.f32 %v4842_v38, %v4840_v29 }
 0x5e3   :  { %3615 = vpow2.f32 %v2217_v20  ;;  %v2111_v48 = vsub.f32 %v4656_v2, %v2040_v39  ;;  %v2112_v55 = vsub.f32 %v4658_v5, %v2040_v39 }
 0x5e4   :  { %v4848_v35 = vpop.eup %3603  ;;  %3617 = vpow2.f32 %v2219_v36  ;;  %2312 = vadd.xlane.f32.xlu0 %v2311_v14 }
 0x5e5   :  { %v4850_v50 = vpop.eup %3605  ;;  %v2221_v53 = vmul.f32 1.442695, %v2111_v48  ;;  %v2223_v13 = vmul.f32 1.442695, %v2112_v55 }
 0x5e6   :  { %v2043_v30 = vpop.xlane.xlu1 %2042  ;;  %v2314_v11 = vadd.f32 %v4850_v50, %v4848_v35 }
 0x5e7   :  { %3619 = vpow2.f32 %v2221_v53  ;;  %v2113_v10 = vsub.f32 %v4662_v54, %v2043_v30  ;;  %v2114_v21 = vsub.f32 %v4664_v31, %v2043_v30 }
 0x5e8   :  { %v4856_v2 = vpop.eup %3607  ;;  %3621 = vpow2.f32 %v2223_v13  ;;  %2315 = vadd.xlane.f32.xlu0 %v2314_v11 }
 0x5e9   :  { %v4858_v5 = vpop.eup %3609  ;;  %v2225_v16 = vmul.f32 1.442695, %v2113_v10  ;;  %v2227_v3 = vmul.f32 1.442695, %v2114_v21 }
 0x5ea   :  { %v2007_v60 = vpop.xlane.xlu1 %2006  ;;  %v2046_v28 = vpop.xlane.xlu0 %2045  ;;  %v2317_v22 = vadd.f32 %v4858_v5, %v4856_v2 }
 0x5eb   :  { %3623 = vpow2.f32 %v2225_v16  ;;  %v2089_v15 = vsub.f32 %v4598_v40, %v2007_v60  ;;  %v2090_v54 = vsub.f32 %v4600_v58, %v2007_v60  ;;  %v2115_v31 = vsub.f32 %v4668_v44, %v2046_v28 }
 0x5ec   :  { %v4865_v51 = vpop.eup %3611  ;;  %3625 = vpow2.f32 %v2227_v3  ;;  %v2116_v20 = vsub.f32 %v4670_v4, %v2046_v28  ;;  %2318 = vadd.xlane.f32.xlu0 %v2317_v22 }
 0x5ed   :  { %v4868_v36 = vpop.eup %3613  ;;  %v2177_v39 = vmul.f32 1.442695, %v2089_v15  ;;  %v2179_v14 = vmul.f32 1.442695, %v2090_v54  ;;  %v2229_v48 = vmul.f32 1.442695, %v2115_v31 }
 0x5ee   :  { %v2231_v55 = vmul.f32 1.442695, %v2116_v20  ;;  %v2010_v53 = vpop.xlane.xlu1 %2009  ;;  %v2049_v13 = vpop.xlane.xlu0 %2048  ;;  %v2320_v40 = vadd.f32 %v4868_v36, %v4865_v51  ;;  %v5127_v15 = vld [vmem:[#allocation12_spill] sm:$0xff] }
 0x5ef   :  { %3627 = vpow2.f32 %v2177_v39  ;;  %v2091_v58 = vsub.f32 %v4602_v56, %v2010_v53  ;;  %v2092_v44 = vsub.f32 %v4604_v49, %v2010_v53  ;;  %v2117_v30 = vsub.f32 %v4676_v32, %v2049_v13  ;;  %v5126_v32 = vld [vmem:[#allocation11_spill] sm:$0xff]  ;;  %v5129_v39 = vld [vmem:[#allocation16_spill] sm:$0xff] }
 0x5f0   :  { %v4875_v4 = vpop.eup %3615  ;;  %3629 = vpow2.f32 %v2179_v14  ;;  %v2118_v11 = vsub.f32 %v4678_v18, %v2049_v13  ;;  %2321 = vadd.xlane.f32.xlu0 %v2320_v40  ;;  %v5128_v18 = vld [vmem:[#allocation15_spill] sm:$0xff] }
 0x5f1   :  { %v4878_v10 = vpop.eup %3617  ;;  %3631 = vpow2.f32 %v2229_v48  ;;  %v2181_v21 = vmul.f32 1.442695, %v2091_v58  ;;  %v2183_v16 = vmul.f32 1.442695, %v2092_v44  ;;  %v2233_v3 = vmul.f32 1.442695, %v2117_v30 }
 0x5f2   :  { %3633 = vpow2.f32 %v2231_v55  ;;  %v2235_v60 = vmul.f32 1.442695, %v2118_v11  ;;  %v2013_v28 = vpop.xlane.xlu1 %2012  ;;  %v2052_v56 = vpop.xlane.xlu0 %2051  ;;  %v2323_v49 = vadd.f32 %v4878_v10, %v4875_v4  ;;  %v5130_v11 = vld [vmem:[#allocation13_spill] sm:$0xff] }
 0x5f3   :  { %3635 = vpow2.f32 %v2181_v21  ;;  %v2093_v22 = vsub.f32 %v5126_v32, %v2013_v28  ;;  %v2094_v54 = vsub.f32 %v5127_v15, %v2013_v28  ;;  %v2119_v31 = vsub.f32 %v5128_v18, %v2052_v56 }
 0x5f4   :  { %v4885_v20 = vpop.eup %3619  ;;  %3637 = vpow2.f32 %v2183_v16  ;;  %v2120_v14 = vsub.f32 %v5129_v39, %v2052_v56  ;;  %2324 = vadd.xlane.f32.xlu0 %v2323_v49  ;;  %v5131_v16 = vld [vmem:[#allocation14_spill] sm:$0xff]  ;;  %v5132_v56 = vld [vmem:[#allocation17_spill] sm:$0xff] }
 0x5f5   :  { %v4888_v48 = vpop.eup %3621  ;;  %3639 = vpow2.f32 %v2233_v3  ;;  %v2185_v55 = vmul.f32 1.442695, %v2093_v22  ;;  %v2187_v53 = vmul.f32 1.442695, %v2094_v54  ;;  %v2237_v13 = vmul.f32 1.442695, %v2119_v31 }
 0x5f6   :  { %3641 = vpow2.f32 %v2235_v60  ;;  %v2239_v40 = vmul.f32 1.442695, %v2120_v14  ;;  %v2016_v58 = vpop.xlane.xlu1 %2015  ;;  %v2055_v44 = vpop.xlane.xlu0 %2054  ;;  %v2326_v30 = vadd.f32 %v4888_v48, %v4885_v20  ;;  %v5133_v3 = vld [vmem:[#allocation18_spill] sm:$0xff] }
 0x5f7   :  { %3643 = vpow2.f32 %v2185_v55  ;;  %v2095_v21 = vsub.f32 %v5130_v11, %v2016_v58  ;;  %v2096_v28 = vsub.f32 %v5131_v16, %v2016_v58  ;;  %v2121_v49 = vsub.f32 %v5132_v56, %v2055_v44  ;;  %v5134_v55 = vld [vmem:[#allocation19_spill] sm:$0xff]  ;;  %v5135_v11 = vld [vmem:[#allocation20_spill] sm:$0xff] }
 0x5f8   :  { %v4895_v32 = vpop.eup %3623  ;;  %3645 = vpow2.f32 %v2187_v53  ;;  %v2122_v22 = vsub.f32 %v5133_v3, %v2055_v44  ;;  %2327 = vadd.xlane.f32.xlu0 %v2326_v30 }
 0x5f9   :  { %v4898_v60 = vpop.eup %3625  ;;  %3647 = vpow2.f32 %v2237_v13  ;;  %v2189_v15 = vmul.f32 1.442695, %v2095_v21  ;;  %v2191_v54 = vmul.f32 1.442695, %v2096_v28  ;;  %v2241_v18 = vmul.f32 1.442695, %v2121_v49 }
 0x5fa   :  { %3649 = vpow2.f32 %v2239_v40  ;;  %v2243_v31 = vmul.f32 1.442695, %v2122_v22  ;;  %v2058_v39 = vpop.xlane.xlu0 %2057  ;;  %v2329_v14 = vadd.f32 %v4898_v60, %v4895_v32  ;;  %v5136_v49 = vld [vmem:[#allocation21_spill] sm:$0xff]  ;;  %v5137_v22 = vld [vmem:[#allocation6_spill] sm:$0xff] }
 0x5fb   :  { %3651 = vpow2.f32 %v2189_v15  ;;  %v2123_v58 = vsub.f32 %v5134_v55, %v2058_v39  ;;  %v2124_v53 = vsub.f32 %v5135_v11, %v2058_v39 }
 0x5fc   :  { %v4904_v16 = vpop.eup %3627  ;;  %3653 = vpow2.f32 %v2191_v54  ;;  %2330 = vadd.xlane.f32.xlu0 %v2329_v14 }
 0x5fd   :  { %v3630_v44 = vpop.eup %3629  ;;  %3655 = vpow2.f32 %v2241_v18  ;;  %v2245_v13 = vmul.f32 1.442695, %v2123_v58  ;;  %v2247_v30 = vmul.f32 1.442695, %v2124_v53 }
 0x5fe   :  { %v4906_v21 = vpop.eup %3631  ;;  %3657 = vpow2.f32 %v2243_v31  ;;  %v2061_v40 = vpop.xlane.xlu0 %2060  ;;  %v2293_v28 = vadd.f32 %v3630_v44, %v4904_v16 }
 0x5ff   :  { %v4909_v56 = vpop.eup %3633  ;;  %3659 = vpow2.f32 %v2245_v13  ;;  %v2125_v3 = vsub.f32 %v5136_v49, %v2061_v40  ;;  %v2126_v15 = vsub.f32 %v5137_v22, %v2061_v40  ;;  %v5138_v40 = vld [vmem:[#allocation7_spill] sm:$0xff] }
 0x600   :  { %v3636_v39 = vpop.eup %3635  ;;  %3661 = vpow2.f32 %v2247_v30  ;;  %2294 = vadd.xlane.f32.xlu1 %v2293_v28  ;;  %v2332_v54 = vadd.f32 %v4909_v56, %v4906_v21 }
 0x601   :  { %v3638_v18 = vpop.eup %3637  ;;  %v2249_v14 = vmul.f32 1.442695, %v2125_v3  ;;  %v2251_v55 = vmul.f32 1.442695, %v2126_v15 }
 0x602   :  { %v4915_v31 = vpop.eup %3639  ;;  %2333 = vadd.xlane.f32.xlu0 %v2332_v54  ;;  %v2064_v58 = vpop.xlane.xlu0 %2063  ;;  %v2296_v11 = vadd.f32 %v3638_v18, %v3636_v39 }
 0x603   :  { %v4917_v53 = vpop.eup %3641  ;;  %3663 = vpow2.f32 %v2249_v14  ;;  %v2127_v13 = vsub.f32 %v4712_v57, %v2064_v58  ;;  %v2128_v49 = vsub.f32 %v5138_v40, %v2064_v58 }
 0x604   :  { %v3644_v30 = vpop.eup %3643  ;;  %3665 = vpow2.f32 %v2251_v55  ;;  %2297 = vadd.xlane.f32.xlu1 %v2296_v11  ;;  %v2335_v28 = vadd.f32 %v4917_v53, %v4915_v31 }
 0x605   :  { %v3646_v3 = vpop.eup %3645  ;;  %v2253_v22 = vmul.f32 1.442695, %v2127_v13  ;;  %v2255_v15 = vmul.f32 1.442695, %v2128_v49 }
 0x606   :  { %v4923_v62 = vpop.eup %3647  ;;  %2336 = vadd.xlane.f32.xlu0 %v2335_v28  ;;  %v2299_v54 = vadd.f32 %v3646_v3, %v3644_v30 }
 0x607   :  { %v4925_v24 = vpop.eup %3649  ;;  %3667 = vpow2.f32 %v2253_v22 }
 0x608   :  { %v3652_v14 = vpop.eup %3651  ;;  %3669 = vpow2.f32 %v2255_v15  ;;  %2300 = vadd.xlane.f32.xlu1 %v2299_v54  ;;  %v2338_v57 = vadd.f32 %v4925_v24, %v4923_v62 }
 0x609   :  { %v3654_v55 = vpop.eup %3653 }
 0x60a   :  { %v3656_v58 = vpop.eup %3655  ;;  %2339 = vadd.xlane.f32.xlu0 %v2338_v57  ;;  %2872 = vmatprep.subr.mxu1 %v3654_v55  ;;  %v2302_v11 = vadd.f32 %v3654_v55, %v3652_v14 }
 0x60b   :  { %v3658_v13 = vpop.eup %3657  ;;  %2873 = vmatpush1.msra.mxu1 %v3652_v14 }
 0x60c   :  { %v3660_v40 = vpop.eup %3659  ;;  %2874 = vmatprep.subr.mxu1 %v3646_v3  ;;  %2303 = vadd.xlane.f32.xlu1 %v2302_v11  ;;  %v2341_v49 = vadd.f32 %v3658_v13, %v3656_v58 }
 0x60d   :  { %v3662_v28 = vpop.eup %3661  ;;  %2875 = vmatpush1.msra.mxu1 %v3644_v30 }
 0x60e   :  { %2342 = vadd.xlane.f32.xlu0 %v2341_v49  ;;  %2876 = vmatprep.subr.mxu1 %v3638_v18  ;;  %v2344_v22 = vadd.f32 %v3662_v28, %v3660_v40 }
 0x60f   :  { %2877 = vmatpush1.msra.mxu1 %v3636_v39 }
 0x610   :  { %v3664_v15 = vpop.eup %3663  ;;  %2878 = vmatprep.subr.mxu1 %v3630_v44 }
 0x611   :  { %v3666_v54 = vpop.eup %3665  ;;  %2879 = vmatpush1.msra.mxu1 %v4904_v16 }
 0x612   :  { %2345 = vadd.xlane.f32.xlu0 %v2344_v22  ;;  %2880 = vmatprep.subr.mxu1 %v4810_v6  ;;  %v2347_v57 = vadd.f32 %v3666_v54, %v3664_v15 }
 0x613   :  { %2881 = vmatpush1.msra.mxu1 %v4808_v33 }
 0x614   :  { %v3668_v3 = vpop.eup %3667  ;;  %2882 = vmatprep.subr.mxu1 %v4804_v9  ;;  %v40_v9 = vld [vmem:[%s5040_s4] sm:$0xf]  ;;  %s3759_s4 = smov [#allocation2]  }
 0x615   :  { %v3670_v14 = vpop.eup %3669  ;;  %2883 = vmatpush1.msra.mxu1 %v4802_v47  ;;  %s2959_s9 = sshll.u32 %s3759_s4, 4  ;;  %s2960_s9 = int_to_ptr.vmem [resolvable:$true] %s2959_s9 }
 0x616   :  { %2348 = vadd.xlane.f32.xlu0 %v2347_v57  ;;  %2884 = vmatprep.subr.mxu1 %v4798_v52  ;;  %v2350_v39 = vadd.f32 %v3670_v14, %v3668_v3  ;;  %s3735_s10 = scalar_lea.vmem %s2960_s9, 256  ;;  %p3740_p1 = scmp.lt.s32.totalorder %s2960_s9, %s2960_s9 }
 0x617   :  { %2885 = vmatpush1.msra.mxu1 %v4796_v34  ;;  %p3736_p0 = scmp.ne.s32.totalorder %s2960_s9, %s3735_s10  ;;  %p3741_p2 = scmp.lt.s32.totalorder %s3735_s10, %s3735_s10 }
 0x618   :  { %2886 = vmatprep.subr.mxu1 %v4792_v59 }
 0x619   :  { %2887 = vmatpush1.msra.mxu1 %v4790_v25  ;;  %p3742_p3 = por %p3741_p2, %p3740_p1 }
 0x61a   :  { %2351 = vadd.xlane.f32.xlu0 %v2350_v39  ;;  %2888 = vmatprep.subr.mxu1 %v4786_v61 }
 0x61b   :  { %2889 = vmatpush1.msra.mxu1 %v4784_v46  ;;  %p3743_p4 = pnand %p3742_p3, %p3736_p0 }
 0x61c   :  { %2890 = vmatprep.subr.mxu1 %v4778_v63 }
 0x61d   :  { %2891 = vmatpush1.msra.mxu1 %v4776_v37  ;;  %43 = vperm.xlu1 %3276, %v40_v9  }
 0x61e   :  { %2892 = vmatprep.subr.mxu1 %v4770_v27 }
 0x61f   :  { %2893 = vmatpush1.msra.mxu1 %v4768_v26 }
 0x620   :  { %2894 = vmatprep.subr.mxu1 %v4762_v12  ;;  %v5140_v12 = vld [vmem:[#allocation8_spill] sm:$0xff] }
 0x621   :  { %2895 = vmatpush1.msra.mxu1 %v4760_v45  ;;  %v5139_v45 = vld [vmem:[#allocation5_spill] sm:$0xff] }
 0x622   :  { %2896 = vmatprep.subr.mxu1 %v4754_v19  ;;  %v4957_v19 = vpop.f32.mrf.mxu1 }
 0x623   :  { %2897 = vmatpush1.msra.mxu1 %v4752_v43 }
 0x624   :  { %2898 = vmatprep.subr.mxu1 %v4746_v0 }
 0x625   :  { %2899 = vmatpush1.msra.mxu1 %v4744_v8  ;;  %v4960_v8 = vpop.f32.mrf.mxu1  ;;  %v2259_v43 = vpop.xlane.xlu1 %2258 }
 0x626   :  { %2900 = vmatprep.subr.mxu1 %v4738_v17  ;;  %3671 = vrcp.f32 %v2259_v43 }
 0x627   :  { %2901 = vmatpush1.msra.mxu1 %v4736_v1 }
 0x628   :  { %2902 = vmatprep.subr.mxu1 %v4730_v42 }
 0x629   :  { %2903 = vmatpush1.msra.mxu1 %v4728_v7  ;;  %v4966_v7 = vpop.f32.mrf.mxu1  ;;  %v2262_v27 = vpop.xlane.xlu1 %2261 }
 0x62a   :  { %2904 = vmatprep.subr.mxu1 %v3670_v14 }
 0x62b   :  { %2905 = vmatpush2.msra.mxu1 %v3668_v3  ;;  %v4972_v42 = vpop.f32.mrf.mxu1 }
 0x62c   :  { %2906 = vmatprep.subr.mxu1 %v3666_v54 }
 0x62d   :  { %2907 = vmatpush2.msra.mxu1 %v3664_v15  ;;  %v4978_v1 = vpop.f32.mrf.mxu1  ;;  %v2265_v46 = vpop.xlane.xlu1 %2264 }
 0x62e   :  { %2908 = vmatprep.subr.mxu1 %v3662_v28 }
 0x62f   :  { %2909 = vmatpush2.msra.mxu1 %v3660_v40  ;;  %v4984_v17 = vpop.f32.mrf.mxu1 }
 0x630   :  { %2910 = vmatprep.subr.mxu1 %v3658_v13 }
 0x631   :  { %2911 = vmatpush2.msra.mxu1 %v3656_v58  ;;  %v4990_v0 = vpop.f32.mrf.mxu1  ;;  %v2268_v25 = vpop.xlane.xlu1 %2267 }
 0x632   :  { %2912 = vmatprep.subr.mxu1 %v4925_v24 }
 0x633   :  { %2913 = vmatpush2.msra.mxu1 %v4923_v62  ;;  %v4995_v26 = vpop.f32.mrf.mxu1 }
 0x634   :  { %2914 = vmatprep.subr.mxu1 %v4917_v53 }
 0x635   :  { %2915 = vmatpush2.msra.mxu1 %v4915_v31  ;;  %v4997_v37 = vpop.f32.mrf.mxu1  ;;  %v2271_v52 = vpop.xlane.xlu1 %2270 }
 0x636   :  { %2916 = vmatprep.subr.mxu1 %v4909_v56 }
 0x637   :  { %2917 = vmatpush2.msra.mxu1 %v4906_v21  ;;  %v4999_v63 = vpop.f32.mrf.mxu1 }
 0x638   :  { %2918 = vmatprep.subr.mxu1 %v4898_v60 }
 0x639   :  { %2919 = vmatpush2.msra.mxu1 %v4895_v32  ;;  %v5001_v61 = vpop.f32.mrf.mxu1  ;;  %v2274_v33 = vpop.xlane.xlu1 %2273 }
 0x63a   :  { %2920 = vmatprep.subr.mxu1 %v4888_v48 }
 0x63b   :  { %2921 = vmatpush2.msra.mxu1 %v4885_v20  ;;  %v5003_v59 = vpop.f32.mrf.mxu1 }
 0x63c   :  { %2922 = vmatprep.subr.mxu1 %v4878_v10 }
 0x63d   :  { %2923 = vmatpush2.msra.mxu1 %v4875_v4  ;;  %v5005_v34 = vpop.f32.mrf.mxu1 }
 0x63e   :  { %2924 = vmatprep.subr.mxu1 %v4868_v36 }
 0x63f   :  { %2925 = vmatpush2.msra.mxu1 %v4865_v51  ;;  %v5007_v47 = vpop.f32.mrf.mxu1 }
 0x640   :  { %2926 = vmatprep.subr.mxu1 %v4858_v5 }
 0x641   :  { %2927 = vmatpush2.msra.mxu1 %v4856_v2  ;;  %v5009_v62 = vpop.f32.mrf.mxu1 }
 0x642   :  { %2928 = vmatprep.subr.mxu1 %v4850_v50 }
 0x643   :  { %2929 = vmatpush2.msra.mxu1 %v4848_v35  ;;  %v3672_v35 = vpop.eup %3671 }
 0x644   :  { %2930 = vmatprep.subr.mxu1 %v4842_v38  ;;  %v2776_v36 = vmul.f32 %v3672_v35, %v4960_v8 }
 0x645   :  { %2931 = vmatpush2.msra.mxu1 %v4840_v29 }
 0x646   :  { %2932 = vmatprep.subr.mxu1 %v4834_v41  ;;  %v2277_v41 = vpop.xlane.xlu1 %2276 }
 0x647   :  { %2933 = vmatpush2.msra.mxu1 %v4832_v23  ;;  %v5011_v23 = vpop.f32.mrf.mxu1 }
 0x648   :  { %2934 = vmatprep.subr.mxu1 %v5139_v45 }
 0x649   :  { %2935 = vmatpush2.msra.mxu1 %v5140_v12  ;;  %v3248_v38 = vpop.f32.mrf.mxu1 }
 0x64a   :  { %v2280_v50 = vpop.xlane.xlu1 %2279 }
 0x64b   :  { %v2697_v51 = vpop.f32.mrf.mxu1 }
 0x64d   :  { %v3251_v60 = vpop.f32.mrf.mxu1 }
 0x64e   :  { %v2283_v16 = vpop.xlane.xlu1 %2282 }
 0x64f   :  { %v2707_v30 = vpop.f32.mrf.mxu1 }
 0x651   :  { %v3254_v22 = vpop.f32.mrf.mxu1 }
 0x652   :  { %v2286_v13 = vpop.xlane.xlu1 %2285 }
 0x653   :  { %v2717_v9 = vpop.f32.mrf.mxu1 }
 0x665   :  { %v2307_v6 = vpop.xlane.xlu0 %2306 }
 0x666   :  { %3673 = vrcp.f32 %v2307_v6 }
 0x667   :  { %3675 = vrcp.f32 %v2262_v27 }
 0x669   :  { %v2310_v24 = vpop.xlane.xlu0 %2309 }
 0x66a   :  { %3677 = vrcp.f32 %v2310_v24 }
 0x66b   :  { %3679 = vrcp.f32 %v2265_v46  ;;  %v3257_v46 = vpop.f32.mrf.mxu1 }
 0x66d   :  { %v2313_v29 = vpop.xlane.xlu0 %2312 }
 0x66e   :  { %3681 = vrcp.f32 %v2313_v29 }
 0x66f   :  { %3683 = vrcp.f32 %v2268_v25 }
 0x671   :  { %v2316_v2 = vpop.xlane.xlu0 %2315 }
 0x672   :  { %3685 = vrcp.f32 %v2316_v2 }
 0x673   :  { %v3674_v5 = vpop.eup %3673  ;;  %3687 = vrcp.f32 %v2271_v52 }
 0x674   :  { %v2792_v4 = vmul.f32 %v3674_v5, %v2697_v51  ;;  %v3676_v10 = vpop.eup %3675 }
 0x675   :  { %v2319_v20 = vpop.xlane.xlu0 %2318  ;;  %v2777_v44 = vmul.f32 %v3676_v10, %v4957_v19  ;;  %v2289_v19 = vpop.xlane.xlu1 %2288 }
 0x676   :  { %3689 = vrcp.f32 %v2319_v20  ;;  %v3314_v48 = vpack.i.bf16 %v2776_v36, %v2792_v4 }
 0x677   :  { %v3678_v32 = vpop.eup %3677  ;;  %3691 = vrcp.f32 %v2274_v33 }
 0x678   :  { %3315 = vxpose.xlu0.b32.start [1/16] (narrow) %v3314_v48, 8  ;;  %v2793_v21 = vmul.f32 %v3678_v32, %v3248_v38  ;;  %v3680_v56 = vpop.eup %3679 }
 0x679   :  { %v2322_v18 = vpop.xlane.xlu0 %2321  ;;  %v2778_v55 = vmul.f32 %v3680_v56, %v4972_v42  ;;  %v2292_v33 = vpop.xlane.xlu1 %2291 }
 0x67a   :  { %3693 = vrcp.f32 %v2322_v18  ;;  %v3316_v31 = vpack.i.bf16 %v2777_v44, %v2793_v21 }
 0x67b   :  { %v3682_v53 = vpop.eup %3681  ;;  %3695 = vrcp.f32 %v2277_v41  ;;  %v2727_v41 = vpop.f32.mrf.mxu1 }
 0x67c   :  { %3317 = vxpose.xlu0.b32.cont [2/16] (narrow) %v3316_v31, 8  ;;  %v2794_v58 = vmul.f32 %v3682_v53, %v2707_v30  ;;  %v3684_v11 = vpop.eup %3683 }
 0x67d   :  { %v2325_v40 = vpop.xlane.xlu0 %2324  ;;  %v2779_v15 = vmul.f32 %v3684_v11, %v4966_v7  ;;  %v3260_v2 = vpop.f32.mrf.mxu1 }
 0x67e   :  { %3697 = vrcp.f32 %v2325_v40  ;;  %v3318_v49 = vpack.i.bf16 %v2778_v55, %v2794_v58 }
 0x67f   :  { %v3686_v28 = vpop.eup %3685  ;;  %3699 = vrcp.f32 %v2280_v50  ;;  %v2737_v20 = vpop.f32.mrf.mxu1 }
 0x680   :  { %3319 = vxpose.xlu0.b32.cont [3/16] (narrow) %v3318_v49, 8  ;;  %v2795_v54 = vmul.f32 %v3686_v28, %v3251_v60  ;;  %v3688_v57 = vpop.eup %3687 }
 0x681   :  { %v2328_v3 = vpop.xlane.xlu0 %2327  ;;  %v2780_v8 = vmul.f32 %v3688_v57, %v4984_v17  ;;  %v3263_v31 = vpop.f32.mrf.mxu1 }
 0x682   :  { %3701 = vrcp.f32 %v2328_v3  ;;  %v3320_v14 = vpack.i.bf16 %v2779_v15, %v2795_v54 }
 0x683   :  { %v3690_v39 = vpop.eup %3689  ;;  %3703 = vrcp.f32 %v2283_v16 }
 0x684   :  { %3321 = vxpose.xlu0.b32.cont [4/16] (narrow) %v3320_v14, 8  ;;  %v2796_v42 = vmul.f32 %v3690_v39, %v2717_v9  ;;  %v3692_v43 = vpop.eup %3691 }
 0x685   :  { %v2331_v45 = vpop.xlane.xlu0 %2330  ;;  %v2781_v7 = vmul.f32 %v3692_v43, %v4978_v1 }
 0x686   :  { %3705 = vrcp.f32 %v2331_v45  ;;  %v3322_v12 = vpack.i.bf16 %v2780_v8, %v2796_v42 }
 0x687   :  { %v3694_v27 = vpop.eup %3693  ;;  %3707 = vrcp.f32 %v2286_v13 }
 0x688   :  { %3323 = vxpose.xlu0.b32.cont [5/16] (narrow) %v3322_v12, 8  ;;  %v2797_v25 = vmul.f32 %v3694_v27, %v3254_v22  ;;  %v3696_v52 = vpop.eup %3695 }
 0x689   :  { %v2782_v17 = vmul.f32 %v3696_v52, %v4995_v26  ;;  %v2295_v50 = vpop.xlane.xlu1 %2294 }
 0x68a   :  { %v3324_v6 = vpack.i.bf16 %v2781_v7, %v2797_v25 }
 0x68b   :  { %v3698_v24 = vpop.eup %3697  ;;  %v2334_v29 = vpop.xlane.xlu0 %2333 }
 0x68c   :  { %3709 = vrcp.f32 %v2334_v29  ;;  %3325 = vxpose.xlu0.b32.cont [6/16] (narrow) %v3324_v6, 8  ;;  %v2798_v38 = vmul.f32 %v3698_v24, %v2727_v41  ;;  %v3700_v35 = vpop.eup %3699 }
 0x68d   :  { %3711 = vrcp.f32 %v2289_v19  ;;  %v2783_v36 = vmul.f32 %v3700_v35, %v4990_v0  ;;  %v2298_v60 = vpop.xlane.xlu1 %2297 }
 0x68e   :  { %v3326_v5 = vpack.i.bf16 %v2782_v17, %v2798_v38 }
 0x68f   :  { %v3702_v51 = vpop.eup %3701  ;;  %v2337_v1 = vpop.xlane.xlu0 %2336 }
 0x690   :  { %3713 = vrcp.f32 %v2337_v1  ;;  %3327 = vxpose.xlu0.b32.cont [7/16] (narrow) %v3326_v5, 8  ;;  %v2799_v4 = vmul.f32 %v3702_v51, %v3257_v46  ;;  %v3704_v10 = vpop.eup %3703 }
 0x691   :  { %3715 = vrcp.f32 %v2292_v33  ;;  %v2784_v16 = vmul.f32 %v3704_v10, %v4999_v63  ;;  %v2301_v53 = vpop.xlane.xlu1 %2300  ;;  %v2747_v63 = vpop.f32.mrf.mxu1 }
 0x692   :  { %v3328_v48 = vpack.i.bf16 %v2783_v36, %v2799_v4 }
 0x693   :  { %v3706_v32 = vpop.eup %3705  ;;  %v2340_v26 = vpop.xlane.xlu0 %2339 }
 0x694   :  { %3717 = vrcp.f32 %v2340_v26  ;;  %3329 = vxpose.xlu0.b32.cont [8/16] (narrow) %v3328_v48, 8  ;;  %v2800_v44 = vmul.f32 %v3706_v32, %v2737_v20  ;;  %v3708_v56 = vpop.eup %3707  ;;  %v3266_v14 = vpop.f32.mrf.mxu1 }
 0x695   :  { %3719 = vrcp.f32 %v2295_v50  ;;  %v2785_v30 = vmul.f32 %v3708_v56, %v4997_v37  ;;  %v2304_v15 = vpop.xlane.xlu1 %2303 }
 0x696   :  { %v3330_v21 = vpack.i.bf16 %v2784_v16, %v2800_v44  ;;  %v2757_v43 = vpop.f32.mrf.mxu1 }
 0x697   :  { %v2343_v18 = vpop.xlane.xlu0 %2342 }
 0x698   :  { %3721 = vrcp.f32 %v2343_v18  ;;  %3331 = vxpose.xlu0.b32.cont [9/16] (narrow) %v3330_v21, 8  ;;  %v3269_v7 = vpop.f32.mrf.mxu1 }
 0x699   :  { %v3710_v0 = vpop.eup %3709  ;;  %3723 = vrcp.f32 %v2298_v60  ;;  %v44_v1 = vpop.permute.xlu1 %43  ;;  %v5142_v60 = vld [vmem:[#allocation10_spill] sm:$0xff] }
 0x69a   :  { %v2801_v55 = vmul.f32 %v3710_v0, %v3260_v2  ;;  %v3712_v58 = vpop.eup %3711  ;;  %v2767_v24 = vpop.f32.mrf.mxu1 }
 0x69b   :  { %v2346_v11 = vpop.xlane.xlu0 %2345  ;;  %v2786_v49 = vmul.f32 %v3712_v58, %v5003_v59 }
 0x69c   :  { %3725 = vrcp.f32 %v2346_v11  ;;  %v3332_v13 = vpack.i.bf16 %v2785_v30, %v2801_v55 }
 0x69d   :  { %v3714_v40 = vpop.eup %3713  ;;  %3727 = vrcp.f32 %v2301_v53 }
 0x69e   :  { %3333 = vxpose.xlu0.b32.cont [10/16] (narrow) %v3332_v13, 8  ;;  %v2802_v28 = vmul.f32 %v3714_v40, %v2747_v63  ;;  %v3716_v22 = vpop.eup %3715 }
 0x69f   :  { %v2349_v54 = vpop.xlane.xlu0 %2348  ;;  %v2787_v37 = vmul.f32 %v3716_v22, %v5001_v61 }
 0x6a0   :  { %3729 = vrcp.f32 %v2349_v54  ;;  %v3334_v57 = vpack.i.bf16 %v2786_v49, %v2802_v28 }
 0x6a1   :  { %v3718_v3 = vpop.eup %3717  ;;  %3731 = vrcp.f32 %v2304_v15 }
 0x6a2   :  { %3335 = vxpose.xlu0.b32.cont [11/16] (narrow) %v3334_v57, 8  ;;  %v2803_v39 = vmul.f32 %v3718_v3, %v3263_v31  ;;  %v3720_v9 = vpop.eup %3719 }
 0x6a3   :  { %v2352_v19 = vpop.xlane.xlu0 %2351  ;;  %v2788_v59 = vmul.f32 %v3720_v9, %v5007_v47 }
 0x6a4   :  { %3733 = vrcp.f32 %v2352_v19  ;;  %v3336_v8 = vpack.i.bf16 %v2787_v37, %v2803_v39 }
 0x6a5   :  { %v3722_v42 = vpop.eup %3721 }
 0x6a6   :  { %3337 = vxpose.xlu0.b32.cont [12/16] (narrow) %v3336_v8, 8  ;;  %v2804_v45 = vmul.f32 %v3722_v42, %v2757_v43  ;;  %v3724_v12 = vpop.eup %3723 }
 0x6a7   :  { %v2789_v25 = vmul.f32 %v3724_v12, %v5005_v34 }
 0x6a8   :  { %v3338_v27 = vpack.i.bf16 %v2788_v59, %v2804_v45 }
 0x6a9   :  { %v3726_v46 = vpop.eup %3725 }
 0x6aa   :  { %3339 = vxpose.xlu0.b32.cont [13/16] (narrow) %v3338_v27, 8  ;;  %v2805_v52 = vmul.f32 %v3726_v46, %v3266_v14  ;;  %v3728_v61 = vpop.eup %3727 }
 0x6ab   :  { %v2790_v41 = vmul.f32 %v3728_v61, %v5011_v23  ;;  %v5141_v23 = vld [vmem:[#allocation9_spill] sm:$0xff] }
 0x6ac   :  { %v3340_v33 = vpack.i.bf16 %v2789_v25, %v2805_v52  ;;  %v1540_v20 = vadd.f32 %v5141_v23, %v44_v1 }
 0x6ad   :  { %v3730_v6 = vpop.eup %3729 }
 0x6ae   :  { %3341 = vxpose.xlu0.b32.cont [14/16] (narrow) %v3340_v33, 8  ;;  %v2806_v29 = vmul.f32 %v3730_v6, %v2767_v24  ;;  %v3732_v17 = vpop.eup %3731 }
 0x6af   :  { %v2791_v35 = vmul.f32 %v3732_v17, %v5009_v62  ;;  %v1542_v62 = vadd.f32 %v5142_v60, %v44_v1 }
 0x6b0   :  { %v3342_v38 = vpack.i.bf16 %v2790_v41, %v2806_v29 }
 0x6b1   :  { %v3734_v47 = vpop.eup %3733 }
 0x6b2   :  { %3343 = vxpose.xlu0.b32.cont [15/16] (narrow) %v3342_v38, 8  ;;  %v2807_v50 = vmul.f32 %v3734_v47, %v3269_v7 }
 0x6b4   :  { %v3344_v2 = vpack.i.bf16 %v2791_v35, %v2807_v50 }
 0x6b6   :  { %3345 = vxpose.xlu0.b32.end [16/16] (narrow) %v3344_v2, 8 }
 0x6f6   :  { %v3346_v5 = vpop.trf.xlu0 }
 0x6f7   :  { %v3350_v34 = vunpack.i.h.bf16 %v3346_v5  ;;  %v3347_v51 = vunpack.i.l.bf16 %v3346_v5 }
 0x6f9   :  { %2936 = vmatprep.mubr.f32.mxu1 %v3347_v51 }
 0x6fa   :  { %2937 = vmatmul.mubr.f32.vlgmr.msra.gmra.mxu1 %v3350_v34 }
 0x7ba   :  { %v2938_v36 = vpop.f32.mrf.mxu1 }
 0x7bb   :  { %v2939_v4 = vadd.f32 %v2938_v36, %v44_v1 }
 0x7bc   :  { %v2940_v10 = vpop.f32.mrf.mxu1 }
 0x7bd   :  { %v2945_v48 = vrot.slane %v2939_v4, 4  ;;  %v2941_v32 = vadd.f32 %v2940_v10, %v44_v1 }
 0x7bf   :  { %v2946_v26 = vrot.slane %v2941_v32, 4  ;;  %v2949_v16 = vsel %vm311_vm1, %v1540_v20, %v2945_v48 }
 0x7c0   :  { %2951 = vst [vmem:[#allocation2] sm:$0xff] %v2949_v16 }
 0x7c1   :  { %v2950_v44 = vsel %vm311_vm1, %v1542_v62, %v2946_v26 }
 0x7c2   :  { %2952 = vst [vmem:[#allocation2 + $0x8] sm:$0xff] %v2950_v44 }
 0x7c3   :  { %3746 = shalt.err (!%p3743_p4)
}
 0x7c4   :  { %2962 = dma.vmem_to_hbm [thread:$0]  %s2960_s9, 256, %s5041_s5, [#allocation3]  }
 0x7c5   :  { %3755 = dma.done.wait [#allocation3], 256  }
 0x7c6   :  { %3756 = vsyncadd [#allocation3], 4294967040 }
 0x7c7   :  { %2966 = vsyncpa [#allocation3], 1 }

</bundles_post_ra>
